<compile_context>
chip_gen: v5e
topology: v5e:2x2
jax: 0.10.0
libtpu: 0.0.40
codegen_flags: <defaults>
</compile_context>

<pallas_src>
import jax
import jax.numpy as jnp
from jax.experimental import pallas as pl
from jax.experimental.pallas import tpu as pltpu


OUT_PAD = 128   # last-layer N padded from 1 -> 128 for lane-dense matmul/stores
TM_CAP = 512    # batch-tile cap (multiple of 8; re-derive if in_features grows)


def _round_up(x, m):
    return (x + m - 1) // m * m


def _leaky_relu(x, slope=0.2):
    return jnp.where(x > 0, x, slope * x)


def _stable_sigmoid(logit):
    # Never exponentiate a positive logit; one EUP approx reciprocal.
    pos = logit >= 0.0
    e = jnp.exp(jnp.where(pos, -logit, logit))        # exp of a non-positive value
    r = pl.reciprocal(1.0 + e, approx=True)           # EUP slot (free under MXU-bound step)
    return jnp.where(pos, r, e * r)


def discriminator_kernel(x_ref,
                         w1_ref, b1_ref,
                         w2_ref, b2_ref,
                         w3_ref, b3_ref,
                         w4_ref, b4_ref,
                         o_ref):
    # x tile: (TM, in_features) f32 -> cast to bf16 in-kernel; weights bf16;
    # biases f32; all accumulation / activations / sigmoid in f32.
    x = x_ref[...].astype(jnp.bfloat16)

    h = jnp.dot(x, w1_ref[...], preferred_element_type=jnp.float32) + b1_ref[...]
    h = _leaky_relu(h)

    h = jnp.dot(h.astype(jnp.bfloat16), w2_ref[...],
                preferred_element_type=jnp.float32) + b2_ref[...]
    h = _leaky_relu(h)

    h = jnp.dot(h.astype(jnp.bfloat16), w3_ref[...],
                preferred_element_type=jnp.float32) + b3_ref[...]
    h = _leaky_relu(h)

    # Last layer padded to 128 output columns (only column 0 is real).
    logit = jnp.dot(h.astype(jnp.bfloat16), w4_ref[...],
                    preferred_element_type=jnp.float32) + b4_ref[...]

    o_ref[...] = _stable_sigmoid(logit).astype(o_ref.dtype)


def prepare_params(params):
    """One-time parameter prep (hoisted out of the per-call forward):
    pad the 128->1 layer to 128->128 and cast weights to bf16 (MXU-native)."""
    (w1, b1), (w2, b2), (w3, b3), (w4, b4) = params
    w4p = jnp.zeros((w4.shape[0], OUT_PAD), jnp.float32).at[:, :1].set(w4)
    b4p = jnp.zeros((1, OUT_PAD), jnp.float32).at[:, :1].set(b4)
    return (w1.astype(jnp.bfloat16), b1,
            w2.astype(jnp.bfloat16), b2,
            w3.astype(jnp.bfloat16), b3,
            w4p.astype(jnp.bfloat16), b4p)


def _tiling(batch_size):
    """Batch tile TM (multiple of 8, f32 sublane rule) and padded batch.
    Guarantees >= 2 grid steps so v7x megacore uses both TensorCores."""
    b8 = _round_up(batch_size, 8)
    if b8 <= 2 * TM_CAP:
        tm = _round_up(pl.cdiv(b8, 2), 8)
    else:
        tm = TM_CAP
    b_pad = _round_up(b8, tm)
    if b_pad // tm < 2:
        b_pad = 2 * tm
    return tm, b_pad


def discriminator_forward(imgs, prepared, batch_size):
    """imgs: (B, C, H, W) NCHW, flattened to (B, C*H*W) as in torch .view()."""
    x = imgs.reshape(batch_size, -1)          # stays f32; bf16 cast happens in-kernel
    in_features = x.shape[1]
    w1b, b1, w2b, b2, w3b, b3, w4b, b4p = prepared

    TM, b_pad = _tiling(batch_size)
    if b_pad != batch_size:
        x = jnp.pad(x, ((0, b_pad - batch_size), (0, 0)))
    grid = (b_pad // TM,)

    # Constant operands: resident in VMEM, single-buffered (no double-buffering
    # needed since the block never changes across the grid).
    def const_spec(shape):
        return pl.BlockSpec(shape, lambda i: (0, 0), pipeline_mode=pl.Buffered(1))

    flops = 2 * b_pad * (in_features * 512 + 512 * 256 + 256 * 128 + 128 * OUT_PAD)
    bytes_accessed = (
        b_pad * in_features * 4                                # x (f32)
        + (w1b.size + w2b.size + w3b.size + w4b.size) * 2      # weights (bf16)
        + (b1.size + b2.size + b3.size + b4p.size) * 4         # biases (f32)
        + b_pad * OUT_PAD * 4                                  # output (f32)
    )

    out = pl.pallas_call(
        discriminator_kernel,
        out_shape=jax.ShapeDtypeStruct((b_pad, OUT_PAD), jnp.float32),
        grid=grid,
        in_specs=[
            pl.BlockSpec((TM, in_features), lambda i: (i, 0)),   # x: tiled over batch
            const_spec(w1b.shape), const_spec(b1.shape),
            const_spec(w2b.shape), const_spec(b2.shape),
            const_spec(w3b.shape), const_spec(b3.shape),
            const_spec(w4b.shape), const_spec(b4p.shape),
        ],
        out_specs=pl.BlockSpec((TM, OUT_PAD), lambda i: (i, 0)),
        compiler_params=pltpu.CompilerParams(
            dimension_semantics=("parallel",)),
        cost_estimate=pl.CostEstimate(
            flops=int(flops),
            transcendentals=int(b_pad * OUT_PAD),
            bytes_accessed=int(bytes_accessed)),
    )(x, w1b, b1, w2b, b2, w3b, b3, w4b, b4p)

    # Drop batch padding and the 127 padded output columns.
    return out[:batch_size, :1]


def init_params(key, in_features):
    """Deterministic init mimicking PyTorch Linear default:
    U(-1/sqrt(fan_in), 1/sqrt(fan_in)) for both weight and bias.
    Weights are stored pre-transposed as (in, out) so the kernel does x @ W."""
    sizes = [(in_features, 512), (512, 256), (256, 128), (128, 1)]
    params = []
    for (fan_in, fan_out) in sizes:
        key, kw, kb = jax.random.split(key, 3)
        bound = 1.0 / jnp.sqrt(fan_in)
        w = jax.random.uniform(kw, (fan_in, fan_out), jnp.float32, -bound, bound)
        b = jax.random.uniform(kb, (1, fan_out), jnp.float32, -bound, bound)
        params.append((w, b))
    return params


def reference_forward(imgs, params, batch_size):
    """Pure-JAX reference with the same bf16-operand / f32-accumulate recipe."""
    x = imgs.reshape(batch_size, -1)
    (w1, b1), (w2, b2), (w3, b3), (w4, b4) = params

    def lin(h, w, b):
        return jnp.dot(h.astype(jnp.bfloat16), w.astype(jnp.bfloat16),
                       preferred_element_type=jnp.float32) + b

    h = _leaky_relu(lin(x, w1, b1))
    h = _leaky_relu(lin(h, w2, b2))
    h = _leaky_relu(lin(h, w3, b3))
    return jax.nn.sigmoid(lin(h, w4, b4))


if __name__ == "__main__":
    key = jax.random.PRNGKey(0)
    k_img, k_par = jax.random.split(key)

    batch_size = 2
    img_dim = (4, 16, 16)          # (channels, width, height)
    in_features = 4 * 16 * 16      # 1024

    imgs = jax.random.normal(k_img, (batch_size,) + img_dim, dtype=jnp.float32)
    params = init_params(k_par, in_features)
    prepared = prepare_params(params)   # one-time: pad last layer + bf16 weights

    out = discriminator_forward(imgs, prepared, batch_size)
    out = jax.block_until_ready(out)

    ref = reference_forward(imgs, params, batch_size)
    assert out.shape == (batch_size, 1)
    assert jnp.allclose(out, ref, atol=2e-3, rtol=2e-3), "mismatch vs JAX reference"

    print("KERNEL_OK")
</pallas_src>

<mosaic_0001>
module attributes {stable_mosaic.version = 11 : i64} {
  func.func @discriminator_kernel(%arg0: i32, %arg1: memref<8x1024xf32, #tpu.memory_space<vmem>>, %arg2: memref<1024x512xbf16, #tpu.memory_space<vmem>>, %arg3: memref<1x512xf32, #tpu.memory_space<vmem>>, %arg4: memref<512x256xbf16, #tpu.memory_space<vmem>>, %arg5: memref<1x256xf32, #tpu.memory_space<vmem>>, %arg6: memref<256x128xbf16, #tpu.memory_space<vmem>>, %arg7: memref<1x128xf32, #tpu.memory_space<vmem>>, %arg8: memref<128x128xbf16, #tpu.memory_space<vmem>>, %arg9: memref<1x128xf32, #tpu.memory_space<vmem>>, %arg10: memref<8x128xf32, #tpu.memory_space<vmem>>) attributes {dimension_semantics = [#tpu.dimension_semantics<parallel>], iteration_bounds = array<i64: 2>, scalar_prefetch = 0 : i64, scratch_operands = 0 : i64, tpu.core_type = #tpu.core_type<tc>, window_params = [{transform_indices = @transform_0, window_bounds = array<i64: 8, 1024>}, {pipeline_mode = #tpu.pipeline_mode<synchronous>, transform_indices = @transform_1, window_bounds = array<i64: 1024, 512>}, {pipeline_mode = #tpu.pipeline_mode<synchronous>, transform_indices = @transform_2, window_bounds = array<i64: 1, 512>}, {pipeline_mode = #tpu.pipeline_mode<synchronous>, transform_indices = @transform_3, window_bounds = array<i64: 512, 256>}, {pipeline_mode = #tpu.pipeline_mode<synchronous>, transform_indices = @transform_4, window_bounds = array<i64: 1, 256>}, {pipeline_mode = #tpu.pipeline_mode<synchronous>, transform_indices = @transform_5, window_bounds = array<i64: 256, 128>}, {pipeline_mode = #tpu.pipeline_mode<synchronous>, transform_indices = @transform_6, window_bounds = array<i64: 1, 128>}, {pipeline_mode = #tpu.pipeline_mode<synchronous>, transform_indices = @transform_7, window_bounds = array<i64: 128, 128>}, {pipeline_mode = #tpu.pipeline_mode<synchronous>, transform_indices = @transform_8, window_bounds = array<i64: 1, 128>}, {transform_indices = @transform_9, window_bounds = array<i64: 8, 128>}]} {
    %c0 = arith.constant 0 : index
    %c0_0 = arith.constant 0 : index
    %0 = vector.load %arg1[%c0, %c0_0] : memref<8x1024xf32, #tpu.memory_space<vmem>>, vector<8x1024xf32>
    %1 = arith.truncf %0 : vector<8x1024xf32> to vector<8x1024xbf16>
    %c0_1 = arith.constant 0 : index
    %c0_2 = arith.constant 0 : index
    %2 = vector.load %arg2[%c0_1, %c0_2] : memref<1024x512xbf16, #tpu.memory_space<vmem>>, vector<1024x512xbf16>
    %cst = arith.constant dense<0.000000e+00> : vector<8x512xf32>
    %3 = tpu.matmul %1, %2, %cst {dimension_numbers = #tpu.dot_dimension_numbers<[1], [0], [0], [1], [0, 0, 1, 1], [], []>} : vector<8x1024xbf16>, vector<1024x512xbf16>, vector<8x512xf32> -> vector<8x512xf32>
    %c0_3 = arith.constant 0 : index
    %c0_4 = arith.constant 0 : index
    %4 = vector.load %arg3[%c0_3, %c0_4] : memref<1x512xf32, #tpu.memory_space<vmem>>, vector<1x512xf32>
    %5 = vector.broadcast %4 : vector<1x512xf32> to vector<8x512xf32>
    %6 = arith.addf %3, %5 : vector<8x512xf32>
    %cst_5 = arith.constant 0.000000e+00 : f32
    %7 = vector.broadcast %cst_5 : f32 to vector<8x512xf32>
    %8 = arith.cmpf ogt, %6, %7 : vector<8x512xf32>
    %cst_6 = arith.constant 2.000000e-01 : f32
    %9 = vector.broadcast %cst_6 : f32 to vector<8x512xf32>
    %10 = arith.mulf %9, %6 : vector<8x512xf32>
    %11 = arith.select %8, %6, %10 : vector<8x512xi1>, vector<8x512xf32>
    %12 = arith.truncf %11 : vector<8x512xf32> to vector<8x512xbf16>
    %c0_7 = arith.constant 0 : index
    %c0_8 = arith.constant 0 : index
    %13 = vector.load %arg4[%c0_7, %c0_8] : memref<512x256xbf16, #tpu.memory_space<vmem>>, vector<512x256xbf16>
    %cst_9 = arith.constant dense<0.000000e+00> : vector<8x256xf32>
    %14 = tpu.matmul %12, %13, %cst_9 {dimension_numbers = #tpu.dot_dimension_numbers<[1], [0], [0], [1], [0, 0, 1, 1], [], []>} : vector<8x512xbf16>, vector<512x256xbf16>, vector<8x256xf32> -> vector<8x256xf32>
    %c0_10 = arith.constant 0 : index
    %c0_11 = arith.constant 0 : index
    %15 = vector.load %arg5[%c0_10, %c0_11] : memref<1x256xf32, #tpu.memory_space<vmem>>, vector<1x256xf32>
    %16 = vector.broadcast %15 : vector<1x256xf32> to vector<8x256xf32>
    %17 = arith.addf %14, %16 : vector<8x256xf32>
    %cst_12 = arith.constant 0.000000e+00 : f32
    %18 = vector.broadcast %cst_12 : f32 to vector<8x256xf32>
    %19 = arith.cmpf ogt, %17, %18 : vector<8x256xf32>
    %cst_13 = arith.constant 2.000000e-01 : f32
    %20 = vector.broadcast %cst_13 : f32 to vector<8x256xf32>
    %21 = arith.mulf %20, %17 : vector<8x256xf32>
    %22 = arith.select %19, %17, %21 : vector<8x256xi1>, vector<8x256xf32>
    %23 = arith.truncf %22 : vector<8x256xf32> to vector<8x256xbf16>
    %c0_14 = arith.constant 0 : index
    %c0_15 = arith.constant 0 : index
    %24 = vector.load %arg6[%c0_14, %c0_15] : memref<256x128xbf16, #tpu.memory_space<vmem>>, vector<256x128xbf16>
    %cst_16 = arith.constant dense<0.000000e+00> : vector<8x128xf32>
    %25 = tpu.matmul %23, %24, %cst_16 {dimension_numbers = #tpu.dot_dimension_numbers<[1], [0], [0], [1], [0, 0, 1, 1], [], []>} : vector<8x256xbf16>, vector<256x128xbf16>, vector<8x128xf32> -> vector<8x128xf32>
    %c0_17 = arith.constant 0 : index
    %c0_18 = arith.constant 0 : index
    %26 = vector.load %arg7[%c0_17, %c0_18] : memref<1x128xf32, #tpu.memory_space<vmem>>, vector<1x128xf32>
    %27 = vector.broadcast %26 : vector<1x128xf32> to vector<8x128xf32>
    %28 = arith.addf %25, %27 : vector<8x128xf32>
    %cst_19 = arith.constant 0.000000e+00 : f32
    %29 = vector.broadcast %cst_19 : f32 to vector<8x128xf32>
    %30 = arith.cmpf ogt, %28, %29 : vector<8x128xf32>
    %cst_20 = arith.constant 2.000000e-01 : f32
    %31 = vector.broadcast %cst_20 : f32 to vector<8x128xf32>
    %32 = arith.mulf %31, %28 : vector<8x128xf32>
    %33 = arith.select %30, %28, %32 : vector<8x128xi1>, vector<8x128xf32>
    %34 = arith.truncf %33 : vector<8x128xf32> to vector<8x128xbf16>
    %c0_21 = arith.constant 0 : index
    %c0_22 = arith.constant 0 : index
    %35 = vector.load %arg8[%c0_21, %c0_22] : memref<128x128xbf16, #tpu.memory_space<vmem>>, vector<128x128xbf16>
    %cst_23 = arith.constant dense<0.000000e+00> : vector<8x128xf32>
    %36 = tpu.matmul %34, %35, %cst_23 {dimension_numbers = #tpu.dot_dimension_numbers<[1], [0], [0], [1], [0, 0, 1, 1], [], []>} : vector<8x128xbf16>, vector<128x128xbf16>, vector<8x128xf32> -> vector<8x128xf32>
    %c0_24 = arith.constant 0 : index
    %c0_25 = arith.constant 0 : index
    %37 = vector.load %arg9[%c0_24, %c0_25] : memref<1x128xf32, #tpu.memory_space<vmem>>, vector<1x128xf32>
    %38 = vector.broadcast %37 : vector<1x128xf32> to vector<8x128xf32>
    %39 = arith.addf %36, %38 : vector<8x128xf32>
    %cst_26 = arith.constant 0.000000e+00 : f32
    %40 = vector.broadcast %cst_26 : f32 to vector<8x128xf32>
    %41 = arith.cmpf oge, %39, %40 : vector<8x128xf32>
    %cst_27 = arith.constant 0.000000e+00 : f32
    %42 = vector.broadcast %cst_27 : f32 to vector<8x128xf32>
    %43 = arith.subf %42, %39 : vector<8x128xf32>
    %44 = arith.select %41, %43, %39 : vector<8x128xi1>, vector<8x128xf32>
    %45 = math.exp %44 : vector<8x128xf32>
    %cst_28 = arith.constant 1.000000e+00 : f32
    %46 = vector.broadcast %cst_28 : f32 to vector<8x128xf32>
    %47 = arith.addf %46, %45 : vector<8x128xf32>
    %48 = tpu.reciprocal %47 {approx = true} : vector<8x128xf32> -> vector<8x128xf32>
    %49 = arith.mulf %45, %48 : vector<8x128xf32>
    %50 = arith.select %41, %48, %49 : vector<8x128xi1>, vector<8x128xf32>
    %c0_29 = arith.constant 0 : index
    %c0_30 = arith.constant 0 : index
    %51 = vector.load %arg10[%c0_29, %c0_30] : memref<8x128xf32, #tpu.memory_space<vmem>>, vector<8x128xf32>
    tpu.vector_store %arg10[%c0_29, %c0_30], %50 {strides = array<i32>} : memref<8x128xf32, #tpu.memory_space<vmem>>, vector<8x128xf32>,
    return
  }
  func.func @transform_0(%arg0: i32) -> (i32, i32) {
    %c0_i32 = arith.constant 0 : i32
    %c0_i32_0 = arith.constant 0 : i32
    return %arg0, %c0_i32 : i32, i32
  }
  func.func @transform_1(%arg0: i32) -> (i32, i32) {
    %c0_i32 = arith.constant 0 : i32
    %c0_i32_0 = arith.constant 0 : i32
    %c0_i32_1 = arith.constant 0 : i32
    return %c0_i32, %c0_i32_0 : i32, i32
  }
  func.func @transform_2(%arg0: i32) -> (i32, i32) {
    %c0_i32 = arith.constant 0 : i32
    %c0_i32_0 = arith.constant 0 : i32
    %c0_i32_1 = arith.constant 0 : i32
    return %c0_i32, %c0_i32_0 : i32, i32
  }
  func.func @transform_3(%arg0: i32) -> (i32, i32) {
    %c0_i32 = arith.constant 0 : i32
    %c0_i32_0 = arith.constant 0 : i32
    %c0_i32_1 = arith.constant 0 : i32
    return %c0_i32, %c0_i32_0 : i32, i32
  }
  func.func @transform_4(%arg0: i32) -> (i32, i32) {
    %c0_i32 = arith.constant 0 : i32
    %c0_i32_0 = arith.constant 0 : i32
    %c0_i32_1 = arith.constant 0 : i32
    return %c0_i32, %c0_i32_0 : i32, i32
  }
  func.func @transform_5(%arg0: i32) -> (i32, i32) {
    %c0_i32 = arith.constant 0 : i32
    %c0_i32_0 = arith.constant 0 : i32
    %c0_i32_1 = arith.constant 0 : i32
    return %c0_i32, %c0_i32_0 : i32, i32
  }
  func.func @transform_6(%arg0: i32) -> (i32, i32) {
    %c0_i32 = arith.constant 0 : i32
    %c0_i32_0 = arith.constant 0 : i32
    %c0_i32_1 = arith.constant 0 : i32
    return %c0_i32, %c0_i32_0 : i32, i32
  }
  func.func @transform_7(%arg0: i32) -> (i32, i32) {
    %c0_i32 = arith.constant 0 : i32
    %c0_i32_0 = arith.constant 0 : i32
    %c0_i32_1 = arith.constant 0 : i32
    return %c0_i32, %c0_i32_0 : i32, i32
  }
  func.func @transform_8(%arg0: i32) -> (i32, i32) {
    %c0_i32 = arith.constant 0 : i32
    %c0_i32_0 = arith.constant 0 : i32
    %c0_i32_1 = arith.constant 0 : i32
    return %c0_i32, %c0_i32_0 : i32, i32
  }
  func.func @transform_9(%arg0: i32) -> (i32, i32) {
    %c0_i32 = arith.constant 0 : i32
    %c0_i32_0 = arith.constant 0 : i32
    return %arg0, %c0_i32 : i32, i32
  }
}

</mosaic_0001>

<bundles_post_ra>
// kernel: tpu_custom_call.1
= control target key start
LH: loop header
LB: loop body
LE: loop exit
PB: predicated region body
PF: predicated region fallthrough
CT: control target
= control target key end

     0   :  { %s5769_s0 = inlined_call_operand.hbm [shape: f32[16,1024], index: 0, kind: input, shape index: {}]   ;;  %s5770_s1 = inlined_call_operand.hbm [shape: bf16[1024,512], index: 1, kind: input, shape index: {}]   ;;  %s5771_s2 = inlined_call_operand.hbm [shape: f32[1,512], index: 2, kind: input, shape index: {}]   ;;  %s5772_s3 = inlined_call_operand.hbm [shape: bf16[512,256], index: 3, kind: input, shape index: {}]   ;;  %s5773_s4 = inlined_call_operand.vmem [shape: f32[1,256], index: 4, kind: input, shape index: {}]   ;;  %s5774_s5 = inlined_call_operand.hbm [shape: bf16[256,128], index: 5, kind: input, shape index: {}]   ;;  %s5775_s6 = inlined_call_operand.vmem [shape: f32[1,128], index: 6, kind: input, shape index: {}]   ;;  %s5776_s7 = inlined_call_operand.hbm [shape: bf16[128,128], index: 7, kind: input, shape index: {}]   ;;  %s5777_s8 = inlined_call_operand.vmem [shape: f32[1,128], index: 8, kind: input, shape index: {}]   ;;  %s5778_s9 = inlined_call_operand.hbm [shape: f32[16,128], index: 9, kind: output, shape index: {}]  }
   0x1   :  { %5779 = sst [smem:[#allocation19_spill]] %s5770_s1 }
   0x2   :  { %5780 = sst [smem:[#allocation20_spill]] %s5771_s2 }
   0x3   :  { %5781 = sst [smem:[#allocation21_spill]] %s5772_s3 }
   0x4   :  { %14 = vsyncpa [#allocation3], 0 }
   0x5   :  { %16 = vsyncpa [#allocation3 + $0x1], 0 }
   0x6   :  { %17 = vsyncpa [#allocation6], 0 }
   0x7   :  { %18 = vsyncpa [#allocation9], 0 }
   0x8   :  { %19 = vsyncpa [#allocation12], 0 }
   0x9   :  { %20 = vsyncpa [#allocation4], 0 }
   0xa   :  { %22 = vsyncpa [#allocation4 + $0x1], 0  ;;  %s5490_s30 = smov 0   ;;  %s5492_s10 = smov 0  }
   0xb   :  { %s5494_s11 = smov 0   ;;  %s5496_s12 = smov 0  }
   0xc LB: > { %s5782_s1 = sld [smem:[#allocation19_spill]]  ;;  %s5514_s16 = sadd.s32 4294967295, %s5427_s12   ;;  %s5427_s12 = sphi %s5496_s12, %s5795_s12   ;;  %s5423_s11 = sphi %s5494_s11, %s5794_s11   ;;  %s5419_s10 = sphi %s5492_s10, %s5793_s10   ;;  %s5415_s30 = sphi %s5490_s30, %s5792_s30  }
   0xd   : > { %p3316_p0 = scmp.ge.s32.totalorder %s5427_s12, 1  ;;  %p49_p1 = scmp.eq.s32.totalorder %s5514_s16, 0 }
   0xe   : > { %p253_p2 = scmp.lt.s32.totalorder %s5427_s12, 3  ;;  %s5429_s18 = smov [#allocation5]  }
   0xf   : > { %s266_s19 = sshll.u32 %s5429_s18, 4  ;;  %s5784_s3 = sld [smem:[#allocation21_spill]]  ;;  %s267_s19 = int_to_ptr.vmem [resolvable:$true] %s266_s19 }
  0x10   : > { %p5519_p3 = pnand %p3316_p0, %p253_p2  ;;  %s5430_s24 = smov [#allocation8]  }
  0x11   : > { %s292_s25 = sshll.u32 %s5430_s24, 4  ;;  %s5431_s26 = smov 256   ;;  %s293_s25 = int_to_ptr.vmem [resolvable:$true] %s292_s25 }
  0x12   : > { %s264_s15 = sshll.u32 %s5782_s1, 4  ;;  %p5083_p4 = pneg %p5519_p3  ;;  %s265_s15 = int_to_ptr.hbm [resolvable:$true] %s264_s15 }
  0x13   : > { %s5432_s27 = smov 16   ;;  %s5433_s28 = smov 128  }
  0x14   : > { %p5531_p6 = pnand %p5083_p4, %p49_p1  ;;  %s5434_s29 = smov 8  }
  0x15   : > { %s290_s22 = sshll.u32 %s5784_s3, 4  ;;  %s5786_s2 = sld [smem:[#allocation20_spill]]  ;;  %s291_s22 = int_to_ptr.hbm [resolvable:$true] %s290_s22 }
  0x16   : > { %5086 = dma.hbm_to_vmem [thread:$0]  (!%p5531_p6), %s265_s15, 32768, %s267_s19, [#allocation6], %s5431_s26, %s5431_s26, %s5432_s27  }
  0x17   : > { %5092 = dma.hbm_to_vmem [thread:$0]  (!%p5531_p6), %s291_s22, 8192, %s293_s25, [#allocation9], %s5433_s28, %s5433_s28, %s5434_s29  }
  0x18   : > { %s5435_s20 = smov [#allocation7]   ;;  %s307_s15 = sshll.u32 %s5774_s5, 4  ;;  %s308_s15 = int_to_ptr.hbm [resolvable:$true] %s307_s15 }
  0x19   : > { %s281_s21 = sshll.u32 %s5435_s20, 4  ;;  %s5436_s19 = smov [#allocation10]   ;;  %s282_s21 = int_to_ptr.vmem [resolvable:$true] %s281_s21 }
  0x1a   : > { %s309_s22 = sshll.u32 %s5436_s19, 4  ;;  %s5437_s25 = smov 64   ;;  %s310_s22 = int_to_ptr.vmem [resolvable:$true] %s309_s22 }
  0x1b   : > { %s279_s18 = sshll.u32 %s5786_s2, 4  ;;  %s5438_s26 = smov 4   ;;  %s280_s18 = int_to_ptr.hbm [resolvable:$true] %s279_s18 }
  0x1c   : > { %5089 = dma.hbm_to_vmem [thread:$0]  (!%p5531_p6), %s280_s18, 64, %s282_s21, [#allocation6]  }
  0x1d   : > { %5095 = dma.hbm_to_vmem [thread:$0]  (!%p5531_p6), %s308_s15, 2048, %s310_s22, [#allocation9], %s5437_s25, %s5437_s25, %s5438_s26  }
  0x1e   : > { %s324_s28 = sshll.u32 %s5776_s7, 4  ;;  %s5439_s29 = smov [#allocation11]   ;;  %s325_s28 = int_to_ptr.hbm [resolvable:$true] %s324_s28 }
  0x1f   : > { %s326_s13 = sshll.u32 %s5439_s29, 4  ;;  %s3315_s14 = sadd.s32 4294967294, %s5427_s12   ;;  %s327_s13 = int_to_ptr.vmem [resolvable:$true] %s326_s13 }
  0x20   : > { %5098 = dma.hbm_to_vmem [thread:$0]  (!%p5531_p6), %s325_s28, 1024, %s327_s13, [#allocation12], %s5437_s25, %s5437_s25, %s5438_s26  }
  0x21   : > { %s5556_s18 = sadd.s32 1, %s5427_s12   ;;  %s35_s20 = sadd.s32 1, %s5423_s11 }
  0x22   : > { %s32_s21 = ssub.s32 %s5427_s12, %s5556_s18  ;;  %p42_p7 = scmp.ne.s32.totalorder %s5423_s11, %s5419_s10 }
  0x23   : > { %p33_p8 = scmp.eq.s32.totalorder %s32_s21, 0  ;;  %p43_p9 = scmp.eq.s32.totalorder %s5427_s12, 0 }
  0x24   : > { %p48_p10 = scmp.ne.s32.totalorder %s5419_s10, %s5415_s30  ;;  %p240_p11 = scmp.eq.s32.totalorder %s5514_s16, 1 }
  0x25   : > { %s5568_s24 = scalar_select %p33_p8, %s5423_s11, %s35_s20  }
  0x26   : > { %p5572_p12 = por %p49_p1, %p48_p10  ;;  %p5576_p13 = por %p240_p11, %p42_p7 }
  0x27   : > { %p246_p0 = scmp.eq.s32.totalorder %s3315_s14, 1  ;;  %p44_p2 = por %p43_p9, %p42_p7 }
  0x28   : > { %s343_s19 = sand.u32 1, %s5423_s11   ;;  %p5112_p6 = scmp.lt.s32.totalorder %s5427_s12, 2 }
  0x29   : > { %p5581_p4 = por %p246_p0, %p48_p10  ;;  %s3323_s25 = sshll.u32 %s343_s19, 6 }
  0x2a   : > { %s4714_s26 = sshll.u32 %s5427_s12, 6  ;;  %s347_s13 = scalar_lea.vmem [#allocation2], %s3323_s25 }
  0x2b   : > { %s352_s28 = scalar_lea.hbm %s5769_s0, %s4714_s26  ;;  %s356_s20 = sshll.u32 %s347_s13, 4  ;;  %s357_s20 = int_to_ptr.vmem [resolvable:$true] %s356_s20 }
  0x2c   : > { %s354_s29 = sshll.u32 %s352_s28, 4  ;;  %p5590_p8 = pnand %p5112_p6, %p44_p2  ;;  %s355_s29 = int_to_ptr.hbm [resolvable:$true] %s354_s29 }
  0x2d   : > { %s344_s21 = scalar_lea.sflag [#allocation3], %s343_s19  ;;  %s5319_s2 = sshra.s32 %s355_s29, 4  ;;  %s5320_s2 = int_to_ptr.hbm [resolvable:$true] %s5319_s2 }
  0x2e   : > { %s5321_s3 = scalar_lea.hbm %s5320_s2, 64  ;;  %p5323_p9 = pneg %p5590_p8 }
  0x2f   : > { %p5322_p7 = scmp.ne.s32.totalorder %s5320_s2, %s5321_s3  ;;  %s5326_s25 = scalar_lea.hbm %s5769_s0, 128 }
  0x30   : > { %p5327_p0 = scmp.lt.s32.totalorder %s5320_s2, %s5769_s0  ;;  %p5328_p2 = scmp.lt.s32.totalorder %s5326_s25, %s5321_s3 }
  0x31   : > { %p5324_p10 = pnand %p5323_p9, %p5322_p7 }
  0x32   : > { %p5329_p6 = por %p5328_p2, %p5327_p0 }
  0x33   : > { %p5325_p11 = pneg %p5324_p10 }
  0x35   : > { %p5330_p5 = pnand %p5329_p6, %p5325_p11 }
  0x37   : > { %5333 = shalt.err (!%p5330_p5)
}
  0x38   : > { %5102 = dma.hbm_to_vmem [thread:$0]  (!%p5590_p8), %s355_s29, 1024, %s357_s20, %s344_s21  }
  0x39   : > { %365 = sbr.rel (%p5519_p3) target bundleno = 921 (0x399), region = 56  ;;  %s5607_s19 = sand.u32 (!%p5519_p3), 1, %s5419_s10  }
  0x3a   : > { %s3327_s13 = sshll.u32 (!%p5519_p3), %s5607_s19, 6  ;;  %s368_s26 = scalar_lea.sflag (!%p5519_p3), [#allocation3], %s5607_s19 }
  0x3b   : > { %s5611_s1 = scalar_lea.vmem (!%p5519_p3), [#allocation2], %s3327_s13 }
  0x3e   : > { %5394 = dma.done.wait (%p5572_p12), %s368_s26, 1024  }
  0x3f   : > { %5396 = vsyncadd (%p5572_p12), %s368_s26, 4294966272 }
  0x40   : > { %5398 = dma.done.wait (%p49_p1), [#allocation6], 32832  }
  0x41   : > { %5400 = vsyncadd (%p49_p1), [#allocation6], 4294934464 }
  0x42   : > { %5402 = dma.done.wait (%p49_p1), [#allocation9], 10240  }
  0x43   : > { %5404 = vsyncadd (%p49_p1), [#allocation9], 4294957056 }
  0x44   : > { %5406 = dma.done.wait (%p49_p1), [#allocation12], 1024  }
  0x45   : > { %5408 = vsyncadd (%p49_p1), [#allocation12], 4294966272  ;;  %v3448_v0 = vld [vmem:[#allocation5 + $0xe0] sm:$0xf]  ;;  %v4745_v1 = vld [vmem:[#allocation5 + $0xec] sm:$0xf0] }
  0x46   : > { %v3576_v2 = vld [vmem:[#allocation5 + $0x1e0] sm:$0xf]  ;;  %v3449_v3 = vor.u32 %v4745_v1, %v3448_v0  ;;  %v4777_v4 = vld [vmem:[#allocation5 + $0x1ec] sm:$0xf0]  ;;  %s3333_s14 = sshll.u32 %s5607_s19, 3  ;;  %s4711_s21 = sshll.u32 %s5514_s16, 3 }
  0x47   : > { %v3704_v5 = vld [vmem:[#allocation5 + $0x2e0] sm:$0xf]  ;;  %v4809_v6 = vld [vmem:[#allocation5 + $0x2ec] sm:$0xf0]  ;;  %v3577_v7 = vor.u32 %v4777_v4, %v3576_v2  ;;  %s3192_s28 = scalar_lea.hbm %s5778_s9, %s4711_s21  ;;  %s431_s13 = scalar_lea.vmem [#allocation13], %s3333_s14 }
  0x48   : > { %v3705_v8 = vor.u32 %v4809_v6, %v3704_v5  ;;  %v3832_v9 = vld [vmem:[#allocation5 + $0x3e0] sm:$0xf]  ;;  %v4841_v10 = vld [vmem:[#allocation5 + $0x3ec] sm:$0xf0]  ;;  %1994 = vmatpush.bf16.msra.mxu0 %v3449_v3  ;;  %s3194_s26 = sshll.u32 %s431_s13, 4  ;;  %s3182_s2 = scalar_lea.sflag [#allocation4], %s5607_s19  ;;  %s3195_s26 = int_to_ptr.vmem [resolvable:$true] %s3194_s26 }
  0x49   : > { %v3432_v11 = vld [vmem:[#allocation5 + $0xc0] sm:$0xf]  ;;  %v3833_v12 = vor.u32 %v4841_v10, %v3832_v9  ;;  %v4741_v13 = vld [vmem:[#allocation5 + $0xcc] sm:$0xf0]  ;;  %2007 = vmatpush.bf16.msra.mxu1 %v3577_v7  ;;  %s5369_s29 = scalar_lea.hbm %s5778_s9, 16 }
  0x4a   : > { %v3560_v14 = vld [vmem:[#allocation5 + $0x1c0] sm:$0xf]  ;;  %v4773_v15 = vld [vmem:[#allocation5 + $0x1cc] sm:$0xf0]  ;;  %2020 = vmatpush.bf16.msra.mxu2 %v3705_v8  ;;  %v3433_v16 = vor.u32 %v4741_v13, %v3432_v11 }
  0x4b   : > { %v3561_v17 = vor.u32 %v4773_v15, %v3560_v14  ;;  %v3688_v18 = vld [vmem:[#allocation5 + $0x2c0] sm:$0xf]  ;;  %v4805_v19 = vld [vmem:[#allocation5 + $0x2cc] sm:$0xf0]  ;;  %2033 = vmatpush.bf16.msra.mxu3 %v3833_v12 }
  0x4c   : > { %v3816_v20 = vld [vmem:[#allocation5 + $0x3c0] sm:$0xf]  ;;  %v3689_v21 = vor.u32 %v4805_v19, %v3688_v18  ;;  %v4837_v22 = vld [vmem:[#allocation5 + $0x3cc] sm:$0xf0]  ;;  %1995 = vmatpush.bf16.msra.mxu0 %v3433_v16 }
  0x4d   : > { %v3416_v23 = vld [vmem:[#allocation5 + $0xa0] sm:$0xf]  ;;  %v4737_v24 = vld [vmem:[#allocation5 + $0xac] sm:$0xf0]  ;;  %v3817_v25 = vor.u32 %v4837_v22, %v3816_v20  ;;  %2008 = vmatpush.bf16.msra.mxu1 %v3561_v17 }
  0x4e   : > { %v3544_v26 = vld [vmem:[#allocation5 + $0x1a0] sm:$0xf]  ;;  %v4769_v27 = vld [vmem:[#allocation5 + $0x1ac] sm:$0xf0]  ;;  %v3417_v29 = vor.u32 %v4737_v24, %v3416_v23  ;;  %2021 = vmatpush.bf16.msra.mxu2 %v3689_v21 }
  0x4f   : > { %v3672_v28 = vld [vmem:[#allocation5 + $0x2a0] sm:$0xf]  ;;  %v4801_v30 = vld [vmem:[#allocation5 + $0x2ac] sm:$0xf0]  ;;  %v3545_v33 = vor.u32 %v4769_v27, %v3544_v26  ;;  %2034 = vmatpush.bf16.msra.mxu3 %v3817_v25 }
  0x50   : > { %v3800_v31 = vld [vmem:[#allocation5 + $0x3a0] sm:$0xf]  ;;  %v4833_v32 = vld [vmem:[#allocation5 + $0x3ac] sm:$0xf0]  ;;  %v3673_v34 = vor.u32 %v4801_v30, %v3672_v28  ;;  %1996 = vmatpush.bf16.msra.mxu0 %v3417_v29 }
  0x51   : > { %v3400_v35 = vld [vmem:[#allocation5 + $0x80] sm:$0xf]  ;;  %v4733_v36 = vld [vmem:[#allocation5 + $0x8c] sm:$0xf0]  ;;  %v3801_v38 = vor.u32 %v4833_v32, %v3800_v31  ;;  %2009 = vmatpush.bf16.msra.mxu1 %v3545_v33 }
  0x52   : > { %v3528_v37 = vld [vmem:[#allocation5 + $0x180] sm:$0xf]  ;;  %v4765_v39 = vld [vmem:[#allocation5 + $0x18c] sm:$0xf0]  ;;  %v3401_v44 = vor.u32 %v4733_v36, %v3400_v35  ;;  %2022 = vmatpush.bf16.msra.mxu2 %v3673_v34 }
  0x53   : > { %v3656_v40 = vld [vmem:[#allocation5 + $0x280] sm:$0xf]  ;;  %v4797_v41 = vld [vmem:[#allocation5 + $0x28c] sm:$0xf0]  ;;  %v3529_v45 = vor.u32 %v4765_v39, %v3528_v37  ;;  %2035 = vmatpush.bf16.msra.mxu3 %v3801_v38 }
  0x54   : > { %v3784_v42 = vld [vmem:[#allocation5 + $0x380] sm:$0xf]  ;;  %v4829_v43 = vld [vmem:[#allocation5 + $0x38c] sm:$0xf0]  ;;  %v3657_v46 = vor.u32 %v4797_v41, %v3656_v40  ;;  %1997 = vmatpush.bf16.msra.mxu0 %v3401_v44 }
  0x55   : > { %v3384_v47 = vld [vmem:[#allocation5 + $0x60] sm:$0xf]  ;;  %v4729_v48 = vld [vmem:[#allocation5 + $0x6c] sm:$0xf0]  ;;  %v3785_v50 = vor.u32 %v4829_v43, %v3784_v42  ;;  %2010 = vmatpush.bf16.msra.mxu1 %v3529_v45 }
  0x56   : > { %v3512_v49 = vld [vmem:[#allocation5 + $0x160] sm:$0xf]  ;;  %v4761_v51 = vld [vmem:[#allocation5 + $0x16c] sm:$0xf0]  ;;  %v3385_v56 = vor.u32 %v4729_v48, %v3384_v47  ;;  %2023 = vmatpush.bf16.msra.mxu2 %v3657_v46 }
  0x57   : > { %v3640_v52 = vld [vmem:[#allocation5 + $0x260] sm:$0xf]  ;;  %v4793_v53 = vld [vmem:[#allocation5 + $0x26c] sm:$0xf0]  ;;  %v3513_v57 = vor.u32 %v4761_v51, %v3512_v49  ;;  %2036 = vmatpush.bf16.msra.mxu3 %v3785_v50 }
  0x58   : > { %v3768_v54 = vld [vmem:[#allocation5 + $0x360] sm:$0xf]  ;;  %v4825_v55 = vld [vmem:[#allocation5 + $0x36c] sm:$0xf0]  ;;  %v3641_v58 = vor.u32 %v4793_v53, %v3640_v52  ;;  %1998 = vmatpush.bf16.msra.mxu0 %v3385_v56 }
  0x59   : > { %v3368_v59 = vld [vmem:[#allocation5 + $0x40] sm:$0xf]  ;;  %v4725_v60 = vld [vmem:[#allocation5 + $0x4c] sm:$0xf0]  ;;  %v3769_v62 = vor.u32 %v4825_v55, %v3768_v54  ;;  %2011 = vmatpush.bf16.msra.mxu1 %v3513_v57 }
  0x5a   : > { %v3496_v61 = vld [vmem:[#allocation5 + $0x140] sm:$0xf]  ;;  %v4757_v63 = vld [vmem:[#allocation5 + $0x14c] sm:$0xf0]  ;;  %v3369_v4 = vor.u32 %v4725_v60, %v3368_v59  ;;  %2024 = vmatpush.bf16.msra.mxu2 %v3641_v58 }
  0x5b   : > { %v3624_v0 = vld [vmem:[#allocation5 + $0x240] sm:$0xf]  ;;  %v4789_v1 = vld [vmem:[#allocation5 + $0x24c] sm:$0xf0]  ;;  %v3497_v5 = vor.u32 %v4757_v63, %v3496_v61  ;;  %2037 = vmatpush.bf16.msra.mxu3 %v3769_v62 }
  0x5c   : > { %v3752_v2 = vld [vmem:[#allocation5 + $0x340] sm:$0xf]  ;;  %v4821_v3 = vld [vmem:[#allocation5 + $0x34c] sm:$0xf0]  ;;  %v3625_v6 = vor.u32 %v4789_v1, %v3624_v0  ;;  %1999 = vmatpush.bf16.msra.mxu0 %v3369_v4 }
  0x5d   : > { %v3352_v7 = vld [vmem:[#allocation5 + $0x20] sm:$0xf]  ;;  %v4721_v8 = vld [vmem:[#allocation5 + $0x2c] sm:$0xf0]  ;;  %v3753_v10 = vor.u32 %v4821_v3, %v3752_v2  ;;  %2012 = vmatpush.bf16.msra.mxu1 %v3497_v5 }
  0x5e   : > { %v3480_v9 = vld [vmem:[#allocation5 + $0x120] sm:$0xf]  ;;  %v4753_v11 = vld [vmem:[#allocation5 + $0x12c] sm:$0xf0]  ;;  %v3353_v16 = vor.u32 %v4721_v8, %v3352_v7  ;;  %2025 = vmatpush.bf16.msra.mxu2 %v3625_v6 }
  0x5f   : > { %v3608_v12 = vld [vmem:[#allocation5 + $0x220] sm:$0xf]  ;;  %v4785_v13 = vld [vmem:[#allocation5 + $0x22c] sm:$0xf0]  ;;  %v3481_v19 = vor.u32 %v4753_v11, %v3480_v9  ;;  %2038 = vmatpush.bf16.msra.mxu3 %v3753_v10  ;;  %v435_v10 = vld [vmem:[%s5611_s1 + $0x18] sm:$0xff] }
  0x60   : > { %v3736_v14 = vld [vmem:[#allocation5 + $0x320] sm:$0xf]  ;;  %v4817_v15 = vld [vmem:[#allocation5 + $0x32c] sm:$0xf0]  ;;  %v3609_v20 = vor.u32 %v4785_v13, %v3608_v12  ;;  %2000 = vmatpush.bf16.msra.mxu0 %v3353_v16  ;;  %v433_v11 = vld [vmem:[%s5611_s1 + $0x8] sm:$0xff]  ;;  %v5638_v16 = vpack.c.bf16 %v435_v10, %v435_v10 }
  0x61   : > { %v3336_v17 = vld [vmem:[#allocation5] sm:$0xf]  ;;  %v4717_v18 = vld [vmem:[#allocation5 + $0xc] sm:$0xf0]  ;;  %v3737_v24 = vor.u32 %v4817_v15, %v3736_v14  ;;  %2013 = vmatpush.bf16.msra.mxu1 %v3481_v19  ;;  %v3578_v10 = vld [vmem:[#allocation5 + $0x1f0] sm:$0xf0] }
  0x62   : > { %v3464_v21 = vld [vmem:[#allocation5 + $0x100] sm:$0xf]  ;;  %v4749_v22 = vld [vmem:[#allocation5 + $0x10c] sm:$0xf0]  ;;  %v3337_v31 = vor.u32 %v4717_v18, %v3336_v17  ;;  %2026 = vmatpush.bf16.msra.mxu2 %v3609_v20  ;;  %v5640_v17 = vpack.c.bf16 %v433_v11, %v433_v11  ;;  %v4807_v11 = vld [vmem:[#allocation5 + $0x2e4] sm:$0xf] }
  0x63   : > { %v3592_v23 = vld [vmem:[#allocation5 + $0x200] sm:$0xf]  ;;  %v4781_v25 = vld [vmem:[#allocation5 + $0x20c] sm:$0xf0]  ;;  %v3465_v35 = vor.u32 %v4749_v22, %v3464_v21  ;;  %2039 = vmatpush.bf16.msra.mxu3 %v3737_v24 }
  0x64   : > { %v3720_v26 = vld [vmem:[#allocation5 + $0x300] sm:$0xf]  ;;  %v4813_v27 = vld [vmem:[#allocation5 + $0x30c] sm:$0xf0]  ;;  %v3593_v36 = vor.u32 %v4781_v25, %v3592_v23  ;;  %2001 = vmatpush.bf16.msra.mxu0 %v3337_v31 }
  0x65   : > { %v3960_v28 = vld [vmem:[#allocation5 + $0x4e0] sm:$0xf]  ;;  %v4873_v29 = vld [vmem:[#allocation5 + $0x4ec] sm:$0xf0]  ;;  %v3721_v39 = vor.u32 %v4813_v27, %v3720_v26  ;;  %2014 = vmatpush.bf16.msra.mxu1 %v3465_v35 }
  0x66   : > { %v4088_v30 = vld [vmem:[#allocation5 + $0x5e0] sm:$0xf]  ;;  %v4905_v32 = vld [vmem:[#allocation5 + $0x5ec] sm:$0xf0]  ;;  %v3961_v40 = vor.u32 %v4873_v29, %v3960_v28  ;;  %2027 = vmatpush.bf16.msra.mxu2 %v3593_v36 }
  0x67   : > { %v4216_v33 = vld [vmem:[#allocation5 + $0x6e0] sm:$0xf]  ;;  %v4937_v34 = vld [vmem:[#allocation5 + $0x6ec] sm:$0xf0]  ;;  %v4089_v41 = vor.u32 %v4905_v32, %v4088_v30  ;;  %2040 = vmatpush.bf16.msra.mxu3 %v3721_v39 }
  0x68   : > { %v4344_v37 = vld [vmem:[#allocation5 + $0x7e0] sm:$0xf]  ;;  %v4969_v38 = vld [vmem:[#allocation5 + $0x7ec] sm:$0xf0]  ;;  %v4217_v42 = vor.u32 %v4937_v34, %v4216_v33  ;;  %2046 = vmatpush.bf16.msrb.mxu0 %v3961_v40  ;;  %2015 = vmatmul.bf16.vlgmr.msra.gmra.mxu1 %v5640_v17 }
  0x69   : > { %v3944_v43 = vld [vmem:[#allocation5 + $0x4c0] sm:$0xf]  ;;  %v4869_v44 = vld [vmem:[#allocation5 + $0x4cc] sm:$0xf0]  ;;  %v4345_v46 = vor.u32 %v4969_v38, %v4344_v37  ;;  %2059 = vmatpush.bf16.msrb.mxu1 %v4089_v41 }
  0x6a   : > { %v4072_v45 = vld [vmem:[#allocation5 + $0x5c0] sm:$0xf]  ;;  %v4901_v47 = vld [vmem:[#allocation5 + $0x5cc] sm:$0xf0]  ;;  %v3945_v52 = vor.u32 %v4869_v44, %v3944_v43  ;;  %2072 = vmatpush.bf16.msrb.mxu2 %v4217_v42  ;;  %2041 = vmatmul.bf16.vlgmr.msra.gmra.mxu3 %v5638_v16 }
  0x6b   : > { %v4200_v48 = vld [vmem:[#allocation5 + $0x6c0] sm:$0xf]  ;;  %v4933_v49 = vld [vmem:[#allocation5 + $0x6cc] sm:$0xf0]  ;;  %v4073_v54 = vor.u32 %v4901_v47, %v4072_v45  ;;  %2085 = vmatpush.bf16.msrb.mxu3 %v4345_v46 }
  0x6c   : > { %v4328_v50 = vld [vmem:[#allocation5 + $0x7c0] sm:$0xf]  ;;  %v4965_v51 = vld [vmem:[#allocation5 + $0x7cc] sm:$0xf0]  ;;  %v4201_v55 = vor.u32 %v4933_v49, %v4200_v48  ;;  %2047 = vmatpush.bf16.msrb.mxu0 %v3945_v52 }
  0x6d   : > { %v3928_v53 = vld [vmem:[#allocation5 + $0x4a0] sm:$0xf]  ;;  %v4865_v56 = vld [vmem:[#allocation5 + $0x4ac] sm:$0xf0]  ;;  %v4329_v59 = vor.u32 %v4965_v51, %v4328_v50  ;;  %2060 = vmatpush.bf16.msrb.mxu1 %v4073_v54 }
  0x6e   : > { %v4056_v57 = vld [vmem:[#allocation5 + $0x5a0] sm:$0xf]  ;;  %v434_v58 = vld [vmem:[%s5611_s1 + $0x10] sm:$0xff]  ;;  %v3929_v2 = vor.u32 %v4865_v56, %v3928_v53  ;;  %2073 = vmatpush.bf16.msrb.mxu2 %v4201_v55 }
  0x6f   : > { %v4897_v60 = vld [vmem:[#allocation5 + $0x5ac] sm:$0xf0]  ;;  %v4184_v61 = vld [vmem:[#allocation5 + $0x6a0] sm:$0xf]  ;;  %v5630_v63 = vpack.c.bf16 %v434_v58, %v434_v58  ;;  %2086 = vmatpush.bf16.msrb.mxu3 %v4329_v59 }
  0x70   : > { %v4929_v62 = vld [vmem:[#allocation5 + $0x6ac] sm:$0xf0]  ;;  %v4312_v0 = vld [vmem:[#allocation5 + $0x7a0] sm:$0xf]  ;;  %v4057_v6 = vor.u32 %v4897_v60, %v4056_v57  ;;  %2048 = vmatpush.bf16.msrb.mxu0 %v3929_v2 }
  0x71   : > { %v4961_v1 = vld [vmem:[#allocation5 + $0x7ac] sm:$0xf0]  ;;  %v3912_v3 = vld [vmem:[#allocation5 + $0x480] sm:$0xf]  ;;  %2028 = vmatmul.bf16.vlgmr.msra.gmra.mxu2 %v5630_v63  ;;  %v4185_v7 = vor.u32 %v4929_v62, %v4184_v61 }
  0x72   : > { %v4861_v4 = vld [vmem:[#allocation5 + $0x48c] sm:$0xf0]  ;;  %v432_v5 = vld [vmem:[%s5611_s1] sm:$0xff]  ;;  %v4313_v12 = vor.u32 %v4961_v1, %v4312_v0  ;;  %2061 = vmatpush.bf16.msrb.mxu1 %v4057_v6  ;;  %v3450_v6 = vld [vmem:[#allocation5 + $0xf0] sm:$0xf0] }
  0x73   : > { %v4040_v8 = vld [vmem:[#allocation5 + $0x580] sm:$0xf]  ;;  %v5634_v9 = vpack.c.bf16 %v432_v5, %v432_v5  ;;  %v4893_v13 = vld [vmem:[#allocation5 + $0x58c] sm:$0xf0]  ;;  %v3913_v20 = vor.u32 %v4861_v4, %v3912_v3  ;;  %2074 = vmatpush.bf16.msrb.mxu2 %v4185_v7  ;;  %v4743_v5 = vld [vmem:[#allocation5 + $0xe4] sm:$0xf] }
  0x74   : > { %v4168_v14 = vld [vmem:[#allocation5 + $0x680] sm:$0xf]  ;;  %v4925_v15 = vld [vmem:[#allocation5 + $0x68c] sm:$0xf0]  ;;  %v4041_v21 = vor.u32 %v4893_v13, %v4040_v8  ;;  %2087 = vmatpush.bf16.msrb.mxu3 %v4313_v12  ;;  %v4775_v7 = vld [vmem:[#allocation5 + $0x1e4] sm:$0xf] }
  0x75   : > { %v4296_v18 = vld [vmem:[#allocation5 + $0x780] sm:$0xf]  ;;  %v4957_v19 = vld [vmem:[#allocation5 + $0x78c] sm:$0xf0]  ;;  %2002 = vmatmul.bf16.vlgmr.msra.gmra.mxu0 %v5634_v9  ;;  %v4169_v22 = vor.u32 %v4925_v15, %v4168_v14  ;;  %v3706_v12 = vld [vmem:[#allocation5 + $0x2f0] sm:$0xf0] }
  0x76   : > { %v3896_v23 = vld [vmem:[#allocation5 + $0x460] sm:$0xf]  ;;  %v4857_v24 = vld [vmem:[#allocation5 + $0x46c] sm:$0xf0]  ;;  %v4297_v26 = vor.u32 %v4957_v19, %v4296_v18  ;;  %2049 = vmatpush.bf16.msrb.mxu0 %v3913_v20  ;;  %2062 = vmatpush.bf16.msrb.mxu1 %v4041_v21  ;;  %v4839_v15 = vld [vmem:[#allocation5 + $0x3e4] sm:$0xf]  ;;  %v3453_v21 = vor.u32 %v4743_v5, %v3450_v6 }
  0x77   : > { %v4024_v25 = vld [vmem:[#allocation5 + $0x560] sm:$0xf]  ;;  %v4889_v27 = vld [vmem:[#allocation5 + $0x56c] sm:$0xf0]  ;;  %v3897_v32 = vor.u32 %v4857_v24, %v3896_v23  ;;  %2075 = vmatpush.bf16.msrb.mxu2 %v4169_v22  ;;  %v3834_v18 = vld [vmem:[#allocation5 + $0x3f0] sm:$0xf0] }
  0x78   : > { %v4152_v28 = vld [vmem:[#allocation5 + $0x660] sm:$0xf]  ;;  %v4921_v29 = vld [vmem:[#allocation5 + $0x66c] sm:$0xf0]  ;;  %v4025_v33 = vor.u32 %v4889_v27, %v4024_v25  ;;  %2088 = vmatpush.bf16.msrb.mxu3 %v4297_v26  ;;  %v4739_v22 = vld [vmem:[#allocation5 + $0xc4] sm:$0xf]  ;;  %v3581_v25 = vor.u32 %v4775_v7, %v3578_v10  ;;  %v3709_v26 = vor.u32 %v4807_v11, %v3706_v12 }
  0x79   : > { %v4280_v30 = vld [vmem:[#allocation5 + $0x760] sm:$0xf]  ;;  %v4953_v31 = vld [vmem:[#allocation5 + $0x76c] sm:$0xf0]  ;;  %v4153_v34 = vor.u32 %v4921_v29, %v4152_v28  ;;  %v439_v24 = vld [vmem:[%s5611_s1 + $0x38] sm:$0xff] }
  0x7a   : > { %v3880_v35 = vld [vmem:[#allocation5 + $0x440] sm:$0xf]  ;;  %v4853_v36 = vld [vmem:[#allocation5 + $0x44c] sm:$0xf0]  ;;  %v4281_v38 = vor.u32 %v4953_v31, %v4280_v30  ;;  %2050 = vmatpush.bf16.msrb.mxu0 %v3897_v32  ;;  %2063 = vmatpush.bf16.msrb.mxu1 %v4025_v33  ;;  %v3434_v27 = vld [vmem:[#allocation5 + $0xd0] sm:$0xf0]  ;;  %v3837_v30 = vor.u32 %v4839_v15, %v3834_v18 }
  0x7b   : > { %v4008_v37 = vld [vmem:[#allocation5 + $0x540] sm:$0xf]  ;;  %v4885_v39 = vld [vmem:[#allocation5 + $0x54c] sm:$0xf0]  ;;  %v3881_v44 = vor.u32 %v4853_v36, %v3880_v35  ;;  %2076 = vmatpush.bf16.msrb.mxu2 %v4153_v34  ;;  %v4771_v28 = vld [vmem:[#allocation5 + $0x1c4] sm:$0xf] }
  0x7c   : > { %v4136_v40 = vld [vmem:[#allocation5 + $0x640] sm:$0xf]  ;;  %v4917_v41 = vld [vmem:[#allocation5 + $0x64c] sm:$0xf0]  ;;  %v4009_v45 = vor.u32 %v4885_v39, %v4008_v37  ;;  %2089 = vmatpush.bf16.msrb.mxu3 %v4281_v38  ;;  %v437_v29 = vld [vmem:[%s5611_s1 + $0x28] sm:$0xff]  ;;  %v5653_v38 = vpack.c.bf16 %v439_v24, %v439_v24  ;;  %v3437_v39 = vor.u32 %v4739_v22, %v3434_v27 }
  0x7d   : > { %v4264_v42 = vld [vmem:[#allocation5 + $0x740] sm:$0xf]  ;;  %v4949_v43 = vld [vmem:[#allocation5 + $0x74c] sm:$0xf0]  ;;  %v4137_v46 = vor.u32 %v4917_v41, %v4136_v40  ;;  %v3562_v31 = vld [vmem:[#allocation5 + $0x1d0] sm:$0xf0]  ;;  %v5655_v40 = vpack.c.bf16 %v437_v29, %v437_v29 }
  0x7e   : > { %v3864_v47 = vld [vmem:[#allocation5 + $0x420] sm:$0xf]  ;;  %v4849_v48 = vld [vmem:[#allocation5 + $0x42c] sm:$0xf0]  ;;  %v4265_v50 = vor.u32 %v4949_v43, %v4264_v42  ;;  %2051 = vmatpush.bf16.msrb.mxu0 %v3881_v44  ;;  %2064 = vmatpush.bf16.msrb.mxu1 %v4009_v45  ;;  %v4803_v32 = vld [vmem:[#allocation5 + $0x2c4] sm:$0xf]  ;;  %v3565_v41 = vor.u32 %v4771_v28, %v3562_v31 }
  0x7f   : > { %v3992_v49 = vld [vmem:[#allocation5 + $0x520] sm:$0xf]  ;;  %v4881_v51 = vld [vmem:[#allocation5 + $0x52c] sm:$0xf0]  ;;  %v3865_v56 = vor.u32 %v4849_v48, %v3864_v47  ;;  %2077 = vmatpush.bf16.msrb.mxu2 %v4137_v46  ;;  %v3690_v33 = vld [vmem:[#allocation5 + $0x2d0] sm:$0xf0] }
  0x80   : > { %v4120_v52 = vld [vmem:[#allocation5 + $0x620] sm:$0xf]  ;;  %v4913_v53 = vld [vmem:[#allocation5 + $0x62c] sm:$0xf0]  ;;  %v3993_v59 = vor.u32 %v4881_v51, %v3992_v49  ;;  %2090 = vmatpush.bf16.msrb.mxu3 %v4265_v50  ;;  %v4835_v35 = vld [vmem:[#allocation5 + $0x3c4] sm:$0xf]  ;;  %v3693_v42 = vor.u32 %v4803_v32, %v3690_v33 }
  0x81   : > { %v4248_v54 = vld [vmem:[#allocation5 + $0x720] sm:$0xf]  ;;  %v4945_v55 = vld [vmem:[#allocation5 + $0x72c] sm:$0xf0]  ;;  %v4121_v60 = vor.u32 %v4913_v53, %v4120_v52  ;;  %v3818_v36 = vld [vmem:[#allocation5 + $0x3d0] sm:$0xf0] }
  0x82   : > { %v3848_v57 = vld [vmem:[#allocation5 + $0x400] sm:$0xf]  ;;  %v4845_v58 = vld [vmem:[#allocation5 + $0x40c] sm:$0xf0]  ;;  %v4249_v1 = vor.u32 %v4945_v55, %v4248_v54  ;;  %2052 = vmatpush.bf16.msrb.mxu0 %v3865_v56  ;;  %2065 = vmatpush.bf16.msrb.mxu1 %v3993_v59  ;;  %v4735_v43 = vld [vmem:[#allocation5 + $0xa4] sm:$0xf]  ;;  %v3821_v46 = vor.u32 %v4835_v35, %v3818_v36 }
  0x83   : > { %v3976_v61 = vld [vmem:[#allocation5 + $0x500] sm:$0xf]  ;;  %v4877_v62 = vld [vmem:[#allocation5 + $0x50c] sm:$0xf0]  ;;  %v3849_v8 = vor.u32 %v4845_v58, %v3848_v57  ;;  %2078 = vmatpush.bf16.msrb.mxu2 %v4121_v60  ;;  %v3418_v44 = vld [vmem:[#allocation5 + $0xb0] sm:$0xf0] }
  0x84   : > { %v4104_v0 = vld [vmem:[#allocation5 + $0x600] sm:$0xf]  ;;  %v4909_v2 = vld [vmem:[#allocation5 + $0x60c] sm:$0xf0]  ;;  %v3977_v13 = vor.u32 %v4877_v62, %v3976_v61  ;;  %2091 = vmatpush.bf16.msrb.mxu3 %v4249_v1  ;;  %v4767_v45 = vld [vmem:[#allocation5 + $0x1a4] sm:$0xf]  ;;  %v3421_v52 = vor.u32 %v4735_v43, %v3418_v44 }
  0x85   : > { %v4232_v3 = vld [vmem:[#allocation5 + $0x700] sm:$0xf]  ;;  %v4941_v4 = vld [vmem:[#allocation5 + $0x70c] sm:$0xf0]  ;;  %v4105_v14 = vor.u32 %v4909_v2, %v4104_v0  ;;  %v3546_v47 = vld [vmem:[#allocation5 + $0x1b0] sm:$0xf0] }
  0x86   : > { %v438_v19 = vld [vmem:[%s5611_s1 + $0x30] sm:$0xff]  ;;  %v4233_v20 = vor.u32 %v4941_v4, %v4232_v3  ;;  %v436_v23 = vld [vmem:[%s5611_s1 + $0x20] sm:$0xff]  ;;  %2053 = vmatpush.bf16.msrb.mxu0 %v3849_v8  ;;  %2066 = vmatpush.bf16.msrb.mxu1 %v3977_v13  ;;  %v3549_v53 = vor.u32 %v4767_v45, %v3546_v47  ;;  %s3196_s1 = sshll.u32 %s3192_s28, 4  ;;  %s3197_s1 = int_to_ptr.hbm [resolvable:$true] %s3196_s1 }
  0x87   : > { %v5649_v34 = vpack.c.bf16 %v438_v19, %v438_v19  ;;  %2079 = vmatpush.bf16.msrb.mxu2 %v4105_v14  ;;  %v5651_v37 = vpack.c.bf16 %v436_v23, %v436_v23  ;;  %v4799_v48 = vld [vmem:[#allocation5 + $0x2a4] sm:$0xf]  ;;  %v3674_v49 = vld [vmem:[#allocation5 + $0x2b0] sm:$0xf0]  ;;  %s5363_s3 = sshra.s32 %s3197_s1, 4  ;;  %s5364_s3 = int_to_ptr.hbm [resolvable:$true] %s5363_s3 }
  0x88   : > { %2092 = vmatpush.bf16.msrb.mxu3 %v4233_v20  ;;  %v4831_v50 = vld [vmem:[#allocation5 + $0x3a4] sm:$0xf]  ;;  %v3802_v51 = vld [vmem:[#allocation5 + $0x3b0] sm:$0xf0]  ;;  %v3677_v54 = vor.u32 %v4799_v48, %v3674_v49  ;;  %s5365_s16 = scalar_lea.hbm %s5364_s3, 8  ;;  %p5370_p12 = scmp.lt.s32.totalorder %s5364_s3, %s5778_s9 }
  0x89   : > { %2054 = vmatmul.bf16.vlgmr.msrb.gmra.mxu0 %v5651_v37  ;;  %2067 = vmatmul.bf16.vlgmr.msrb.gmra.mxu1 %v5655_v40  ;;  %v4731_v55 = vld [vmem:[#allocation5 + $0x84] sm:$0xf]  ;;  %v3402_v56 = vld [vmem:[#allocation5 + $0x90] sm:$0xf0]  ;;  %v3805_v58 = vor.u32 %v4831_v50, %v3802_v51  ;;  %p5366_p1 = scmp.ne.s32.totalorder %s5364_s3, %s5365_s16  ;;  %p5371_p8 = scmp.lt.s32.totalorder %s5369_s29, %s5365_s16 }
  0x8a   : > { %2098 = vmatpush.bf16.msra.mxu0 %v3453_v21  ;;  %2111 = vmatpush.bf16.msra.mxu1 %v3581_v25  ;;  %v4763_v57 = vld [vmem:[#allocation5 + $0x184] sm:$0xf]  ;;  %v3530_v59 = vld [vmem:[#allocation5 + $0x190] sm:$0xf0]  ;;  %v3405_v1 = vor.u32 %v4731_v55, %v3402_v56 }
  0x8b   : > { %2124 = vmatpush.bf16.msra.mxu2 %v3709_v26  ;;  %2093 = vmatmul.bf16.vlgmr.msrb.gmra.mxu3 %v5653_v38  ;;  %v4795_v60 = vld [vmem:[#allocation5 + $0x284] sm:$0xf]  ;;  %v3658_v61 = vld [vmem:[#allocation5 + $0x290] sm:$0xf0]  ;;  %v3533_v2 = vor.u32 %v4763_v57, %v3530_v59  ;;  %p5367_p3 = pnand %p5366_p1, %p5576_p13  ;;  %p5372_p7 = por %p5371_p8, %p5370_p12 }
  0x8c   : > { %2137 = vmatpush.bf16.msra.mxu3 %v3837_v30  ;;  %2080 = vmatmul.bf16.vlgmr.msrb.gmra.mxu2 %v5649_v34  ;;  %v4827_v62 = vld [vmem:[#allocation5 + $0x384] sm:$0xf]  ;;  %v3786_v0 = vld [vmem:[#allocation5 + $0x390] sm:$0xf0]  ;;  %v3661_v3 = vor.u32 %v4795_v60, %v3658_v61 }
  0x8d   : > { %v4727_v4 = vld [vmem:[#allocation5 + $0x64] sm:$0xf]  ;;  %v3386_v5 = vld [vmem:[#allocation5 + $0x70] sm:$0xf0]  ;;  %v3789_v7 = vor.u32 %v4827_v62, %v3786_v0  ;;  %p5368_p5 = pneg %p5367_p3 }
  0x8e   : > { %2099 = vmatpush.bf16.msra.mxu0 %v3437_v39  ;;  %2112 = vmatpush.bf16.msra.mxu1 %v3565_v41  ;;  %v4759_v6 = vld [vmem:[#allocation5 + $0x164] sm:$0xf]  ;;  %v3514_v8 = vld [vmem:[#allocation5 + $0x170] sm:$0xf0]  ;;  %v3389_v14 = vor.u32 %v4727_v4, %v3386_v5 }
  0x8f   : > { %2125 = vmatpush.bf16.msra.mxu2 %v3693_v42  ;;  %v4791_v10 = vld [vmem:[#allocation5 + $0x264] sm:$0xf]  ;;  %v3642_v11 = vld [vmem:[#allocation5 + $0x270] sm:$0xf0]  ;;  %v3517_v15 = vor.u32 %v4759_v6, %v3514_v8  ;;  %p5373_p9 = pnand %p5372_p7, %p5368_p5 }
  0x90   : > { %2138 = vmatpush.bf16.msra.mxu3 %v3821_v46  ;;  %v4823_v12 = vld [vmem:[#allocation5 + $0x364] sm:$0xf]  ;;  %v3770_v13 = vld [vmem:[#allocation5 + $0x370] sm:$0xf0]  ;;  %v3645_v18 = vor.u32 %v4791_v10, %v3642_v11 }
  0x91   : > { %v4723_v19 = vld [vmem:[#allocation5 + $0x44] sm:$0xf]  ;;  %v3370_v20 = vld [vmem:[#allocation5 + $0x50] sm:$0xf0]  ;;  %v3773_v22 = vor.u32 %v4823_v12, %v3770_v13 }
  0x92   : > { %2100 = vmatpush.bf16.msra.mxu0 %v3421_v52  ;;  %2113 = vmatpush.bf16.msra.mxu1 %v3549_v53  ;;  %v4755_v21 = vld [vmem:[#allocation5 + $0x144] sm:$0xf]  ;;  %v3498_v23 = vld [vmem:[#allocation5 + $0x150] sm:$0xf0]  ;;  %v3373_v28 = vor.u32 %v4723_v19, %v3370_v20 }
  0x93   : > { %2126 = vmatpush.bf16.msra.mxu2 %v3677_v54  ;;  %v4787_v24 = vld [vmem:[#allocation5 + $0x244] sm:$0xf]  ;;  %v3626_v25 = vld [vmem:[#allocation5 + $0x250] sm:$0xf0]  ;;  %v3501_v29 = vor.u32 %v4755_v21, %v3498_v23 }
  0x94   : > { %2139 = vmatpush.bf16.msra.mxu3 %v3805_v58  ;;  %v4819_v26 = vld [vmem:[#allocation5 + $0x344] sm:$0xf]  ;;  %v3754_v27 = vld [vmem:[#allocation5 + $0x350] sm:$0xf0]  ;;  %v3629_v30 = vor.u32 %v4787_v24, %v3626_v25 }
  0x95   : > { %v4719_v31 = vld [vmem:[#allocation5 + $0x24] sm:$0xf]  ;;  %v3354_v32 = vld [vmem:[#allocation5 + $0x30] sm:$0xf0]  ;;  %v3757_v35 = vor.u32 %v4819_v26, %v3754_v27 }
  0x96   : > { %2101 = vmatpush.bf16.msra.mxu0 %v3405_v1  ;;  %2114 = vmatpush.bf16.msra.mxu1 %v3533_v2  ;;  %v4751_v33 = vld [vmem:[#allocation5 + $0x124] sm:$0xf]  ;;  %v3482_v36 = vld [vmem:[#allocation5 + $0x130] sm:$0xf0]  ;;  %v3357_v44 = vor.u32 %v4719_v31, %v3354_v32 }
  0x97   : > { %2127 = vmatpush.bf16.msra.mxu2 %v3661_v3  ;;  %v4783_v39 = vld [vmem:[#allocation5 + $0x224] sm:$0xf]  ;;  %v3610_v41 = vld [vmem:[#allocation5 + $0x230] sm:$0xf0]  ;;  %v3485_v47 = vor.u32 %v4751_v33, %v3482_v36 }
  0x98   : > { %2140 = vmatpush.bf16.msra.mxu3 %v3789_v7  ;;  %v4815_v42 = vld [vmem:[#allocation5 + $0x324] sm:$0xf]  ;;  %v3738_v43 = vld [vmem:[#allocation5 + $0x330] sm:$0xf0]  ;;  %v3613_v48 = vor.u32 %v4783_v39, %v3610_v41 }
  0x99   : > { %v4715_v45 = vld [vmem:[#allocation5 + $0x4] sm:$0xf]  ;;  %v3338_v46 = vld [vmem:[#allocation5 + $0x10] sm:$0xf0]  ;;  %v3741_v52 = vor.u32 %v4815_v42, %v3738_v43 }
  0x9a   : > { %2102 = vmatpush.bf16.msra.mxu0 %v3389_v14  ;;  %2115 = vmatpush.bf16.msra.mxu1 %v3517_v15  ;;  %v4747_v49 = vld [vmem:[#allocation5 + $0x104] sm:$0xf]  ;;  %v3466_v50 = vld [vmem:[#allocation5 + $0x110] sm:$0xf0]  ;;  %v3341_v59 = vor.u32 %v4715_v45, %v3338_v46 }
  0x9b   : > { %2128 = vmatpush.bf16.msra.mxu2 %v3645_v18  ;;  %v4779_v51 = vld [vmem:[#allocation5 + $0x204] sm:$0xf]  ;;  %v3594_v53 = vld [vmem:[#allocation5 + $0x210] sm:$0xf0]  ;;  %v3469_v0 = vor.u32 %v4747_v49, %v3466_v50 }
  0x9c   : > { %2141 = vmatpush.bf16.msra.mxu3 %v3773_v22  ;;  %v4811_v54 = vld [vmem:[#allocation5 + $0x304] sm:$0xf]  ;;  %v3722_v55 = vld [vmem:[#allocation5 + $0x310] sm:$0xf0]  ;;  %v3597_v1 = vor.u32 %v4779_v51, %v3594_v53 }
  0x9d   : > { %v4871_v56 = vld [vmem:[#allocation5 + $0x4e4] sm:$0xf]  ;;  %v3962_v57 = vld [vmem:[#allocation5 + $0x4f0] sm:$0xf0]  ;;  %v3725_v4 = vor.u32 %v4811_v54, %v3722_v55 }
  0x9e   : > { %2103 = vmatpush.bf16.msra.mxu0 %v3373_v28  ;;  %2116 = vmatpush.bf16.msra.mxu1 %v3501_v29  ;;  %v4903_v58 = vld [vmem:[#allocation5 + $0x5e4] sm:$0xf]  ;;  %v4090_v60 = vld [vmem:[#allocation5 + $0x5f0] sm:$0xf0]  ;;  %v3965_v5 = vor.u32 %v4871_v56, %v3962_v57 }
  0x9f   : > { %2129 = vmatpush.bf16.msra.mxu2 %v3629_v30  ;;  %v4935_v61 = vld [vmem:[#allocation5 + $0x6e4] sm:$0xf]  ;;  %v4218_v62 = vld [vmem:[#allocation5 + $0x6f0] sm:$0xf0]  ;;  %v4093_v6 = vor.u32 %v4903_v58, %v4090_v60 }
  0xa0   : > { %2142 = vmatpush.bf16.msra.mxu3 %v3757_v35  ;;  %v4967_v2 = vld [vmem:[#allocation5 + $0x7e4] sm:$0xf]  ;;  %v4346_v3 = vld [vmem:[#allocation5 + $0x7f0] sm:$0xf0]  ;;  %v4221_v7 = vor.u32 %v4935_v61, %v4218_v62 }
  0xa1   : > { %v4867_v8 = vld [vmem:[#allocation5 + $0x4c4] sm:$0xf]  ;;  %v3946_v10 = vld [vmem:[#allocation5 + $0x4d0] sm:$0xf0]  ;;  %v4349_v12 = vor.u32 %v4967_v2, %v4346_v3 }
  0xa2   : > { %2104 = vmatpush.bf16.msra.mxu0 %v3357_v44  ;;  %2117 = vmatpush.bf16.msra.mxu1 %v3485_v47  ;;  %v4899_v11 = vld [vmem:[#allocation5 + $0x5c4] sm:$0xf]  ;;  %v4074_v13 = vld [vmem:[#allocation5 + $0x5d0] sm:$0xf0]  ;;  %v3949_v20 = vor.u32 %v4867_v8, %v3946_v10 }
  0xa3   : > { %2130 = vmatpush.bf16.msra.mxu2 %v3613_v48  ;;  %v4931_v14 = vld [vmem:[#allocation5 + $0x6c4] sm:$0xf]  ;;  %v4202_v15 = vld [vmem:[#allocation5 + $0x6d0] sm:$0xf0]  ;;  %v4077_v21 = vor.u32 %v4899_v11, %v4074_v13 }
  0xa4   : > { %2143 = vmatpush.bf16.msra.mxu3 %v3741_v52  ;;  %v4963_v18 = vld [vmem:[#allocation5 + $0x7c4] sm:$0xf]  ;;  %v4330_v19 = vld [vmem:[#allocation5 + $0x7d0] sm:$0xf0]  ;;  %v4205_v22 = vor.u32 %v4931_v14, %v4202_v15 }
  0xa5   : > { %v4863_v23 = vld [vmem:[#allocation5 + $0x4a4] sm:$0xf]  ;;  %v3930_v24 = vld [vmem:[#allocation5 + $0x4b0] sm:$0xf0]  ;;  %v4333_v26 = vor.u32 %v4963_v18, %v4330_v19 }
  0xa6   : > { %2105 = vmatpush.bf16.msra.mxu0 %v3341_v59  ;;  %2118 = vmatpush.bf16.msra.mxu1 %v3469_v0  ;;  %v4895_v25 = vld [vmem:[#allocation5 + $0x5a4] sm:$0xf]  ;;  %v4058_v27 = vld [vmem:[#allocation5 + $0x5b0] sm:$0xf0]  ;;  %v3933_v32 = vor.u32 %v4863_v23, %v3930_v24 }
  0xa7   : > { %2131 = vmatpush.bf16.msra.mxu2 %v3597_v1  ;;  %v4927_v28 = vld [vmem:[#allocation5 + $0x6a4] sm:$0xf]  ;;  %v4186_v29 = vld [vmem:[#allocation5 + $0x6b0] sm:$0xf0]  ;;  %v4061_v33 = vor.u32 %v4895_v25, %v4058_v27 }
  0xa8   : > { %2144 = vmatpush.bf16.msra.mxu3 %v3725_v4  ;;  %v4959_v30 = vld [vmem:[#allocation5 + $0x7a4] sm:$0xf]  ;;  %v4314_v31 = vld [vmem:[#allocation5 + $0x7b0] sm:$0xf0]  ;;  %v4189_v35 = vor.u32 %v4927_v28, %v4186_v29 }
  0xa9   : > { %2106 = vmatmul.bf16.vlgmr.msra.gmra.mxu0 %v5634_v9  ;;  %2119 = vmatmul.bf16.vlgmr.msra.gmra.mxu1 %v5640_v17  ;;  %v4859_v36 = vld [vmem:[#allocation5 + $0x484] sm:$0xf]  ;;  %v3914_v39 = vld [vmem:[#allocation5 + $0x490] sm:$0xf0]  ;;  %v4317_v42 = vor.u32 %v4959_v30, %v4314_v31 }
  0xaa   : > { %2150 = vmatpush.bf16.msrb.mxu0 %v3965_v5  ;;  %2163 = vmatpush.bf16.msrb.mxu1 %v4093_v6  ;;  %v4891_v41 = vld [vmem:[#allocation5 + $0x584] sm:$0xf]  ;;  %v4042_v43 = vld [vmem:[#allocation5 + $0x590] sm:$0xf0]  ;;  %v3917_v48 = vor.u32 %v4859_v36, %v3914_v39  ;;  %v3456_v39 = vld [vmem:[#allocation5 + $0xe8] sm:$0xf] }
  0xab   : > { %2176 = vmatpush.bf16.msrb.mxu2 %v4221_v7  ;;  %2145 = vmatmul.bf16.vlgmr.msra.gmra.mxu3 %v5638_v16  ;;  %v4923_v44 = vld [vmem:[#allocation5 + $0x684] sm:$0xf]  ;;  %v4170_v45 = vld [vmem:[#allocation5 + $0x690] sm:$0xf0]  ;;  %v4045_v49 = vor.u32 %v4891_v41, %v4042_v43  ;;  %v4746_v41 = vld [vmem:[#allocation5 + $0xf4] sm:$0xf0] }
  0xac   : > { %2189 = vmatpush.bf16.msrb.mxu3 %v4349_v12  ;;  %2132 = vmatmul.bf16.vlgmr.msra.gmra.mxu2 %v5630_v63  ;;  %v4955_v46 = vld [vmem:[#allocation5 + $0x784] sm:$0xf]  ;;  %v4298_v47 = vld [vmem:[#allocation5 + $0x790] sm:$0xf0]  ;;  %v4173_v50 = vor.u32 %v4923_v44, %v4170_v45  ;;  %v4778_v44 = vld [vmem:[#allocation5 + $0x1f4] sm:$0xf0] }
  0xad   : > { %v4855_v51 = vld [vmem:[#allocation5 + $0x464] sm:$0xf]  ;;  %v3898_v52 = vld [vmem:[#allocation5 + $0x470] sm:$0xf0]  ;;  %v4301_v54 = vor.u32 %v4955_v46, %v4298_v47  ;;  %v3712_v45 = vld [vmem:[#allocation5 + $0x2e8] sm:$0xf] }
  0xae   : > { %2151 = vmatpush.bf16.msrb.mxu0 %v3949_v20  ;;  %2164 = vmatpush.bf16.msrb.mxu1 %v4077_v21  ;;  %v4887_v53 = vld [vmem:[#allocation5 + $0x564] sm:$0xf]  ;;  %v4026_v55 = vld [vmem:[#allocation5 + $0x570] sm:$0xf0]  ;;  %v3901_v60 = vor.u32 %v4855_v51, %v3898_v52  ;;  %v4810_v46 = vld [vmem:[#allocation5 + $0x2f4] sm:$0xf0]  ;;  %v3457_v52 = vor.u32 %v4746_v41, %v3456_v39 }
  0xaf   : > { %2177 = vmatpush.bf16.msrb.mxu2 %v4205_v22  ;;  %v4919_v56 = vld [vmem:[#allocation5 + $0x664] sm:$0xf]  ;;  %v4154_v57 = vld [vmem:[#allocation5 + $0x670] sm:$0xf0]  ;;  %v4029_v61 = vor.u32 %v4887_v53, %v4026_v55  ;;  %v3440_v55 = vld [vmem:[#allocation5 + $0xc8] sm:$0xf] }
  0xb0   : > { %2190 = vmatpush.bf16.msrb.mxu3 %v4333_v26  ;;  %v4951_v58 = vld [vmem:[#allocation5 + $0x764] sm:$0xf]  ;;  %v4282_v59 = vld [vmem:[#allocation5 + $0x770] sm:$0xf0]  ;;  %v4157_v62 = vor.u32 %v4919_v56, %v4154_v57  ;;  %v4742_v56 = vld [vmem:[#allocation5 + $0xd4] sm:$0xf0] }
  0xb1   : > { %v4851_v0 = vld [vmem:[#allocation5 + $0x444] sm:$0xf]  ;;  %v3882_v1 = vld [vmem:[#allocation5 + $0x450] sm:$0xf0]  ;;  %v4285_v3 = vor.u32 %v4951_v58, %v4282_v59  ;;  %v3568_v57 = vld [vmem:[#allocation5 + $0x1c8] sm:$0xf] }
  0xb2   : > { %2152 = vmatpush.bf16.msrb.mxu0 %v3933_v32  ;;  %2165 = vmatpush.bf16.msrb.mxu1 %v4061_v33  ;;  %v4883_v2 = vld [vmem:[#allocation5 + $0x544] sm:$0xf]  ;;  %v4010_v4 = vld [vmem:[#allocation5 + $0x550] sm:$0xf0]  ;;  %v3885_v10 = vor.u32 %v4851_v0, %v3882_v1  ;;  %v4774_v59 = vld [vmem:[#allocation5 + $0x1d4] sm:$0xf0]  ;;  %v3441_v1 = vor.u32 %v4742_v56, %v3440_v55 }
  0xb3   : > { %2178 = vmatpush.bf16.msrb.mxu2 %v4189_v35  ;;  %v4915_v5 = vld [vmem:[#allocation5 + $0x644] sm:$0xf]  ;;  %v4138_v6 = vld [vmem:[#allocation5 + $0x650] sm:$0xf0]  ;;  %v4013_v11 = vor.u32 %v4883_v2, %v4010_v4  ;;  %v4838_v0 = vld [vmem:[#allocation5 + $0x3d4] sm:$0xf0]  ;;  %v3569_v2 = vor.u32 %v4774_v59, %v3568_v57 }
  0xb4   : > { %2191 = vmatpush.bf16.msrb.mxu3 %v4317_v42  ;;  %v4947_v7 = vld [vmem:[#allocation5 + $0x744] sm:$0xf]  ;;  %v4266_v8 = vld [vmem:[#allocation5 + $0x750] sm:$0xf0]  ;;  %v4141_v12 = vor.u32 %v4915_v5, %v4138_v6  ;;  %v3584_v42 = vld [vmem:[#allocation5 + $0x1e8] sm:$0xf] }
  0xb5   : > { %v4847_v13 = vld [vmem:[#allocation5 + $0x424] sm:$0xf]  ;;  %v3866_v14 = vld [vmem:[#allocation5 + $0x430] sm:$0xf0]  ;;  %v4269_v18 = vor.u32 %v4947_v7, %v4266_v8  ;;  %v3585_v53 = vor.u32 %v4778_v44, %v3584_v42  ;;  %v3424_v4 = vld [vmem:[#allocation5 + $0xa8] sm:$0xf] }
  0xb6   : > { %2153 = vmatpush.bf16.msrb.mxu0 %v3917_v48  ;;  %2166 = vmatpush.bf16.msrb.mxu1 %v4045_v49  ;;  %v4879_v15 = vld [vmem:[#allocation5 + $0x524] sm:$0xf]  ;;  %v3994_v19 = vld [vmem:[#allocation5 + $0x530] sm:$0xf0]  ;;  %v3869_v24 = vor.u32 %v4847_v13, %v3866_v14  ;;  %v3840_v49 = vld [vmem:[#allocation5 + $0x3e8] sm:$0xf] }
  0xb7   : > { %2179 = vmatpush.bf16.msrb.mxu2 %v4173_v50  ;;  %v4911_v20 = vld [vmem:[#allocation5 + $0x624] sm:$0xf]  ;;  %v4122_v21 = vld [vmem:[#allocation5 + $0x630] sm:$0xf0]  ;;  %v3997_v27 = vor.u32 %v4879_v15, %v3994_v19  ;;  %v4842_v50 = vld [vmem:[#allocation5 + $0x3f4] sm:$0xf0] }
  0xb8   : > { %2192 = vmatpush.bf16.msrb.mxu3 %v4301_v54  ;;  %v4943_v22 = vld [vmem:[#allocation5 + $0x724] sm:$0xf]  ;;  %v4250_v23 = vld [vmem:[#allocation5 + $0x730] sm:$0xf0]  ;;  %v4125_v28 = vor.u32 %v4911_v20, %v4122_v21  ;;  %v3713_v54 = vor.u32 %v4810_v46, %v3712_v45  ;;  %v3841_v58 = vor.u32 %v4842_v50, %v3840_v49  ;;  %v4738_v5 = vld [vmem:[#allocation5 + $0xb4] sm:$0xf0] }
  0xb9   : > { %v4843_v25 = vld [vmem:[#allocation5 + $0x404] sm:$0xf]  ;;  %v3850_v26 = vld [vmem:[#allocation5 + $0x410] sm:$0xf0]  ;;  %v4253_v32 = vor.u32 %v4943_v22, %v4250_v23  ;;  %v3552_v6 = vld [vmem:[#allocation5 + $0x1a8] sm:$0xf]  ;;  %v3425_v14 = vor.u32 %v4738_v5, %v3424_v4 }
  0xba   : > { %2154 = vmatpush.bf16.msrb.mxu0 %v3901_v60  ;;  %2167 = vmatpush.bf16.msrb.mxu1 %v4029_v61  ;;  %v4875_v29 = vld [vmem:[#allocation5 + $0x504] sm:$0xf]  ;;  %v3978_v30 = vld [vmem:[#allocation5 + $0x510] sm:$0xf0]  ;;  %v3853_v43 = vor.u32 %v4843_v25, %v3850_v26  ;;  %v3696_v60 = vld [vmem:[#allocation5 + $0x2c8] sm:$0xf] }
  0xbb   : > { %2180 = vmatpush.bf16.msrb.mxu2 %v4157_v62  ;;  %v4907_v31 = vld [vmem:[#allocation5 + $0x604] sm:$0xf]  ;;  %v4106_v33 = vld [vmem:[#allocation5 + $0x610] sm:$0xf0]  ;;  %v3981_v47 = vor.u32 %v4875_v29, %v3978_v30  ;;  %v4806_v61 = vld [vmem:[#allocation5 + $0x2d4] sm:$0xf0] }
  0xbc   : > { %2193 = vmatpush.bf16.msrb.mxu3 %v4285_v3  ;;  %v4939_v35 = vld [vmem:[#allocation5 + $0x704] sm:$0xf]  ;;  %v4234_v36 = vld [vmem:[#allocation5 + $0x710] sm:$0xf0]  ;;  %v4109_v48 = vor.u32 %v4907_v31, %v4106_v33  ;;  %v3824_v62 = vld [vmem:[#allocation5 + $0x3c8] sm:$0xf]  ;;  %v3697_v3 = vor.u32 %v4806_v61, %v3696_v60 }
  0xbd   : > { %v4237_v51 = vor.u32 %v4939_v35, %v4234_v36  ;;  %v3825_v7 = vor.u32 %v4838_v0, %v3824_v62  ;;  %v4770_v8 = vld [vmem:[#allocation5 + $0x1b4] sm:$0xf0]  ;;  %v3408_v19 = vld [vmem:[#allocation5 + $0x88] sm:$0xf] }
  0xbe   : > { %2155 = vmatpush.bf16.msrb.mxu0 %v3885_v10  ;;  %2168 = vmatpush.bf16.msrb.mxu1 %v4013_v11  ;;  %v3680_v10 = vld [vmem:[#allocation5 + $0x2a8] sm:$0xf]  ;;  %v4802_v11 = vld [vmem:[#allocation5 + $0x2b4] sm:$0xf0]  ;;  %v3553_v15 = vor.u32 %v4770_v8, %v3552_v6 }
  0xbf   : > { %2181 = vmatpush.bf16.msrb.mxu2 %v4141_v12  ;;  %v3808_v12 = vld [vmem:[#allocation5 + $0x3a8] sm:$0xf]  ;;  %v4834_v13 = vld [vmem:[#allocation5 + $0x3b4] sm:$0xf0] }
  0xc0   : > { %2194 = vmatpush.bf16.msrb.mxu3 %v4269_v18  ;;  %v3681_v18 = vor.u32 %v4802_v11, %v3680_v10  ;;  %v4734_v20 = vld [vmem:[#allocation5 + $0x94] sm:$0xf0]  ;;  %v3536_v21 = vld [vmem:[#allocation5 + $0x188] sm:$0xf]  ;;  %v3809_v22 = vor.u32 %v4834_v13, %v3808_v12 }
  0xc1   : > { %v4766_v23 = vld [vmem:[#allocation5 + $0x194] sm:$0xf0]  ;;  %v3792_v26 = vld [vmem:[#allocation5 + $0x388] sm:$0xf] }
  0xc2   : > { %2156 = vmatpush.bf16.msrb.mxu0 %v3869_v24  ;;  %2169 = vmatpush.bf16.msrb.mxu1 %v3997_v27  ;;  %v3664_v24 = vld [vmem:[#allocation5 + $0x288] sm:$0xf]  ;;  %v4798_v25 = vld [vmem:[#allocation5 + $0x294] sm:$0xf0]  ;;  %v3537_v29 = vor.u32 %v4766_v23, %v3536_v21 }
  0xc3   : > { %2182 = vmatpush.bf16.msrb.mxu2 %v4125_v28  ;;  %v4830_v27 = vld [vmem:[#allocation5 + $0x394] sm:$0xf0]  ;;  %v3409_v28 = vor.u32 %v4734_v20, %v3408_v19  ;;  %v3665_v30 = vor.u32 %v4798_v25, %v3664_v24  ;;  %v3392_v31 = vld [vmem:[#allocation5 + $0x68] sm:$0xf] }
  0xc4   : > { %2195 = vmatpush.bf16.msrb.mxu3 %v4253_v32  ;;  %v4730_v32 = vld [vmem:[#allocation5 + $0x74] sm:$0xf0]  ;;  %v3520_v33 = vld [vmem:[#allocation5 + $0x168] sm:$0xf]  ;;  %v3793_v35 = vor.u32 %v4830_v27, %v3792_v26 }
  0xc5   : > { %v4762_v36 = vld [vmem:[#allocation5 + $0x174] sm:$0xf0]  ;;  %v3648_v39 = vld [vmem:[#allocation5 + $0x268] sm:$0xf]  ;;  %v3393_v44 = vor.u32 %v4730_v32, %v3392_v31 }
  0xc6   : > { %2157 = vmatpush.bf16.msrb.mxu0 %v3853_v43  ;;  %2170 = vmatpush.bf16.msrb.mxu1 %v3981_v47  ;;  %v4794_v41 = vld [vmem:[#allocation5 + $0x274] sm:$0xf0]  ;;  %v3776_v42 = vld [vmem:[#allocation5 + $0x368] sm:$0xf]  ;;  %v3521_v45 = vor.u32 %v4762_v36, %v3520_v33 }
  0xc7   : > { %2183 = vmatpush.bf16.msrb.mxu2 %v4109_v48  ;;  %v4826_v43 = vld [vmem:[#allocation5 + $0x374] sm:$0xf0]  ;;  %v3649_v46 = vor.u32 %v4794_v41, %v3648_v39  ;;  %v3376_v47 = vld [vmem:[#allocation5 + $0x48] sm:$0xf] }
  0xc8   : > { %2196 = vmatpush.bf16.msrb.mxu3 %v4237_v51  ;;  %v4726_v48 = vld [vmem:[#allocation5 + $0x54] sm:$0xf0]  ;;  %v3504_v49 = vld [vmem:[#allocation5 + $0x148] sm:$0xf]  ;;  %v3777_v50 = vor.u32 %v4826_v43, %v3776_v42 }
  0xc9   : > { %2158 = vmatmul.bf16.vlgmr.msrb.gmra.mxu0 %v5651_v37  ;;  %2171 = vmatmul.bf16.vlgmr.msrb.gmra.mxu1 %v5655_v40  ;;  %v4758_v51 = vld [vmem:[#allocation5 + $0x154] sm:$0xf0]  ;;  %v3377_v56 = vor.u32 %v4726_v48, %v3376_v47  ;;  %v3360_v59 = vld [vmem:[#allocation5 + $0x28] sm:$0xf] }
  0xca   : > { %2202 = vmatpush.bf16.msra.mxu0 %v3457_v52  ;;  %2215 = vmatpush.bf16.msra.mxu1 %v3585_v53  ;;  %v3632_v52 = vld [vmem:[#allocation5 + $0x248] sm:$0xf]  ;;  %v4790_v53 = vld [vmem:[#allocation5 + $0x254] sm:$0xf0]  ;;  %v3505_v57 = vor.u32 %v4758_v51, %v3504_v49 }
  0xcb   : > { %2228 = vmatpush.bf16.msra.mxu2 %v3713_v54  ;;  %2197 = vmatmul.bf16.vlgmr.msrb.gmra.mxu3 %v5653_v38  ;;  %v3760_v54 = vld [vmem:[#allocation5 + $0x348] sm:$0xf]  ;;  %v4822_v55 = vld [vmem:[#allocation5 + $0x354] sm:$0xf0] }
  0xcc   : > { %2241 = vmatpush.bf16.msra.mxu3 %v3841_v58  ;;  %2184 = vmatmul.bf16.vlgmr.msrb.gmra.mxu2 %v5649_v34  ;;  %v3633_v58 = vor.u32 %v4790_v53, %v3632_v52  ;;  %v4722_v60 = vld [vmem:[#allocation5 + $0x34] sm:$0xf0]  ;;  %v3488_v61 = vld [vmem:[#allocation5 + $0x128] sm:$0xf]  ;;  %v3761_v62 = vor.u32 %v4822_v55, %v3760_v54 }
  0xcd   : > { %v4754_v0 = vld [vmem:[#allocation5 + $0x134] sm:$0xf0]  ;;  %v3361_v5 = vor.u32 %v4722_v60, %v3360_v59  ;;  %v3344_v6 = vld [vmem:[#allocation5 + $0x8] sm:$0xf] }
  0xce   : > { %2203 = vmatpush.bf16.msra.mxu0 %v3441_v1  ;;  %2216 = vmatpush.bf16.msra.mxu1 %v3569_v2  ;;  %v3616_v1 = vld [vmem:[#allocation5 + $0x228] sm:$0xf]  ;;  %v4786_v2 = vld [vmem:[#allocation5 + $0x234] sm:$0xf0]  ;;  %v3489_v8 = vor.u32 %v4754_v0, %v3488_v61 }
  0xcf   : > { %2229 = vmatpush.bf16.msra.mxu2 %v3697_v3  ;;  %v3744_v3 = vld [vmem:[#allocation5 + $0x328] sm:$0xf]  ;;  %v4818_v4 = vld [vmem:[#allocation5 + $0x334] sm:$0xf0]  ;;  %v3617_v10 = vor.u32 %v4786_v2, %v3616_v1 }
  0xd0   : > { %2242 = vmatpush.bf16.msra.mxu3 %v3825_v7  ;;  %v4718_v7 = vld [vmem:[#allocation5 + $0x14] sm:$0xf0]  ;;  %v3472_v11 = vld [vmem:[#allocation5 + $0x108] sm:$0xf] }
  0xd1   : > { %v4750_v12 = vld [vmem:[#allocation5 + $0x114] sm:$0xf0]  ;;  %v3600_v13 = vld [vmem:[#allocation5 + $0x208] sm:$0xf]  ;;  %v3345_v23 = vor.u32 %v4718_v7, %v3344_v6  ;;  %v5673_v7 = vld [vmem:[#allocation7] sm:$0xf] }
  0xd2   : > { %2204 = vmatpush.bf16.msra.mxu0 %v3425_v14  ;;  %2217 = vmatpush.bf16.msra.mxu1 %v3553_v15  ;;  %v3745_v14 = vor.u32 %v4818_v4, %v3744_v3  ;;  %v4782_v15 = vld [vmem:[#allocation5 + $0x214] sm:$0xf0]  ;;  %v3968_v20 = vld [vmem:[#allocation5 + $0x4e8] sm:$0xf]  ;;  %v3473_v27 = vor.u32 %v4750_v12, %v3472_v11 }
  0xd3   : > { %2230 = vmatpush.bf16.msra.mxu2 %v3681_v18  ;;  %v3728_v18 = vld [vmem:[#allocation5 + $0x308] sm:$0xf]  ;;  %v4814_v19 = vld [vmem:[#allocation5 + $0x314] sm:$0xf0] }
  0xd4   : > { %2243 = vmatpush.bf16.msra.mxu3 %v3809_v22  ;;  %v4874_v21 = vld [vmem:[#allocation5 + $0x4f4] sm:$0xf0]  ;;  %v4096_v22 = vld [vmem:[#allocation5 + $0x5e8] sm:$0xf]  ;;  %v3729_v31 = vor.u32 %v4814_v19, %v3728_v18  ;;  %v706_v19 = vperm.slane %v5673_v7, 0 }
  0xd5   : > { %v4906_v24 = vld [vmem:[#allocation5 + $0x5f4] sm:$0xf0]  ;;  %v4224_v25 = vld [vmem:[#allocation5 + $0x6e8] sm:$0xf]  ;;  %v3969_v32 = vor.u32 %v4874_v21, %v3968_v20 }
  0xd6   : > { %2205 = vmatpush.bf16.msra.mxu0 %v3409_v28  ;;  %2218 = vmatpush.bf16.msra.mxu1 %v3537_v29  ;;  %v4938_v26 = vld [vmem:[#allocation5 + $0x6f4] sm:$0xf0]  ;;  %v3601_v28 = vor.u32 %v4782_v15, %v3600_v13  ;;  %v4352_v29 = vld [vmem:[#allocation5 + $0x7e8] sm:$0xf]  ;;  %v4097_v33 = vor.u32 %v4906_v24, %v4096_v22 }
  0xd7   : > { %2231 = vmatpush.bf16.msra.mxu2 %v3665_v30  ;;  %v4970_v30 = vld [vmem:[#allocation5 + $0x7f4] sm:$0xf0]  ;;  %v3952_v36 = vld [vmem:[#allocation5 + $0x4c8] sm:$0xf] }
  0xd8   : > { %2244 = vmatpush.bf16.msra.mxu3 %v3793_v35  ;;  %v4225_v35 = vor.u32 %v4938_v26, %v4224_v25  ;;  %v4870_v39 = vld [vmem:[#allocation5 + $0x4d4] sm:$0xf0]  ;;  %v4080_v41 = vld [vmem:[#allocation5 + $0x5c8] sm:$0xf]  ;;  %v4353_v42 = vor.u32 %v4970_v30, %v4352_v29 }
  0xd9   : > { %v4902_v43 = vld [vmem:[#allocation5 + $0x5d4] sm:$0xf0]  ;;  %v3953_v48 = vor.u32 %v4870_v39, %v3952_v36  ;;  %v3936_v51 = vld [vmem:[#allocation5 + $0x4a8] sm:$0xf] }
  0xda   : > { %2206 = vmatpush.bf16.msra.mxu0 %v3393_v44  ;;  %2219 = vmatpush.bf16.msra.mxu1 %v3521_v45  ;;  %v4208_v44 = vld [vmem:[#allocation5 + $0x6c8] sm:$0xf]  ;;  %v4934_v45 = vld [vmem:[#allocation5 + $0x6d4] sm:$0xf0]  ;;  %v4081_v49 = vor.u32 %v4902_v43, %v4080_v41 }
  0xdb   : > { %2232 = vmatpush.bf16.msra.mxu2 %v3649_v46  ;;  %v4336_v46 = vld [vmem:[#allocation5 + $0x7c8] sm:$0xf]  ;;  %v4966_v47 = vld [vmem:[#allocation5 + $0x7d4] sm:$0xf0] }
  0xdc   : > { %2245 = vmatpush.bf16.msra.mxu3 %v3777_v50  ;;  %v4209_v50 = vor.u32 %v4934_v45, %v4208_v44  ;;  %v4866_v52 = vld [vmem:[#allocation5 + $0x4b4] sm:$0xf0]  ;;  %v4064_v53 = vld [vmem:[#allocation5 + $0x5a8] sm:$0xf]  ;;  %v4337_v54 = vor.u32 %v4966_v47, %v4336_v46 }
  0xdd   : > { %v4898_v55 = vld [vmem:[#allocation5 + $0x5b4] sm:$0xf0]  ;;  %v3937_v60 = vor.u32 %v4866_v52, %v3936_v51  ;;  %v3920_v61 = vld [vmem:[#allocation5 + $0x488] sm:$0xf] }
  0xde   : > { %2207 = vmatpush.bf16.msra.mxu0 %v3377_v56  ;;  %2220 = vmatpush.bf16.msra.mxu1 %v3505_v57  ;;  %v4192_v56 = vld [vmem:[#allocation5 + $0x6a8] sm:$0xf]  ;;  %v4930_v57 = vld [vmem:[#allocation5 + $0x6b4] sm:$0xf0] }
  0xdf   : > { %2233 = vmatpush.bf16.msra.mxu2 %v3633_v58  ;;  %v4320_v58 = vld [vmem:[#allocation5 + $0x7a8] sm:$0xf]  ;;  %v4962_v59 = vld [vmem:[#allocation5 + $0x7b4] sm:$0xf0]  ;;  %v4193_v0 = vor.u32 %v4930_v57, %v4192_v56 }
  0xe0   : > { %2246 = vmatpush.bf16.msra.mxu3 %v3761_v62  ;;  %v4065_v62 = vor.u32 %v4898_v55, %v4064_v53  ;;  %v4862_v1 = vld [vmem:[#allocation5 + $0x494] sm:$0xf0]  ;;  %v4048_v2 = vld [vmem:[#allocation5 + $0x588] sm:$0xf]  ;;  %v4321_v4 = vor.u32 %v4962_v59, %v4320_v58 }
  0xe1   : > { %v4894_v3 = vld [vmem:[#allocation5 + $0x594] sm:$0xf0]  ;;  %v3921_v11 = vor.u32 %v4862_v1, %v3920_v61  ;;  %v3904_v12 = vld [vmem:[#allocation5 + $0x468] sm:$0xf] }
  0xe2   : > { %2208 = vmatpush.bf16.msra.mxu0 %v3361_v5  ;;  %2221 = vmatpush.bf16.msra.mxu1 %v3489_v8  ;;  %v4176_v5 = vld [vmem:[#allocation5 + $0x688] sm:$0xf]  ;;  %v4926_v6 = vld [vmem:[#allocation5 + $0x694] sm:$0xf0]  ;;  %v4049_v13 = vor.u32 %v4894_v3, %v4048_v2 }
  0xe3   : > { %2234 = vmatpush.bf16.msra.mxu2 %v3617_v10  ;;  %v4304_v8 = vld [vmem:[#allocation5 + $0x788] sm:$0xf]  ;;  %v4958_v10 = vld [vmem:[#allocation5 + $0x794] sm:$0xf0] }
  0xe4   : > { %2247 = vmatpush.bf16.msra.mxu3 %v3745_v14  ;;  %v4177_v14 = vor.u32 %v4926_v6, %v4176_v5  ;;  %v4858_v15 = vld [vmem:[#allocation5 + $0x474] sm:$0xf0]  ;;  %v4032_v18 = vld [vmem:[#allocation5 + $0x568] sm:$0xf]  ;;  %v4305_v20 = vor.u32 %v4958_v10, %v4304_v8 }
  0xe5   : > { %v4890_v21 = vld [vmem:[#allocation5 + $0x574] sm:$0xf0]  ;;  %v4160_v22 = vld [vmem:[#allocation5 + $0x668] sm:$0xf]  ;;  %v3905_v26 = vor.u32 %v4858_v15, %v3904_v12  ;;  %v2016_v44 = vpop.f32.mrf.mxu1  ;;  %v3458_v15 = vld [vmem:[#allocation5 + $0xf8] sm:$0xf0] }
  0xe6   : > { %2209 = vmatpush.bf16.msra.mxu0 %v3345_v23  ;;  %2222 = vmatpush.bf16.msra.mxu1 %v3473_v27  ;;  %v4922_v23 = vld [vmem:[#allocation5 + $0x674] sm:$0xf0]  ;;  %v4288_v24 = vld [vmem:[#allocation5 + $0x768] sm:$0xf] }
  0xe7   : > { %2235 = vmatpush.bf16.msra.mxu2 %v3601_v28  ;;  %v4954_v25 = vld [vmem:[#allocation5 + $0x774] sm:$0xf0]  ;;  %v4033_v28 = vor.u32 %v4890_v21, %v4032_v18  ;;  %v4161_v29 = vor.u32 %v4922_v23, %v4160_v22  ;;  %v3888_v30 = vld [vmem:[#allocation5 + $0x448] sm:$0xf]  ;;  %v4776_v18 = vld [vmem:[#allocation5 + $0x1ec] sm:$0xf] }
  0xe8   : > { %2248 = vmatpush.bf16.msra.mxu3 %v3729_v31  ;;  %v4854_v31 = vld [vmem:[#allocation5 + $0x454] sm:$0xf0]  ;;  %v4144_v39 = vld [vmem:[#allocation5 + $0x648] sm:$0xf]  ;;  %v3586_v22 = vld [vmem:[#allocation5 + $0x1f8] sm:$0xf0] }
  0xe9   : > { %2210 = vmatmul.bf16.vlgmr.msra.gmra.mxu0 %v5634_v9  ;;  %2223 = vmatmul.bf16.vlgmr.msra.gmra.mxu1 %v5640_v17  ;;  %v4886_v36 = vld [vmem:[#allocation5 + $0x554] sm:$0xf0]  ;;  %v3889_v46 = vor.u32 %v4854_v31, %v3888_v30  ;;  %v4000_v52 = vld [vmem:[#allocation5 + $0x528] sm:$0xf]  ;;  %v4808_v23 = vld [vmem:[#allocation5 + $0x2ec] sm:$0xf]  ;;  %v3589_v31 = vor.u32 %v4776_v18, %v3586_v22 }
  0xea   : > { %2254 = vmatpush.bf16.msrb.mxu0 %v3969_v32  ;;  %2267 = vmatpush.bf16.msrb.mxu1 %v4097_v33  ;;  %v4016_v32 = vld [vmem:[#allocation5 + $0x548] sm:$0xf]  ;;  %v4918_v41 = vld [vmem:[#allocation5 + $0x654] sm:$0xf0]  ;;  %v3394_v18 = vld [vmem:[#allocation5 + $0x78] sm:$0xf0] }
  0xeb   : > { %2280 = vmatpush.bf16.msrb.mxu2 %v4225_v35  ;;  %2249 = vmatmul.bf16.vlgmr.msra.gmra.mxu3 %v5638_v16  ;;  %v4289_v35 = vor.u32 %v4954_v25, %v4288_v24  ;;  %v4950_v43 = vld [vmem:[#allocation5 + $0x754] sm:$0xf0]  ;;  %v4128_v55 = vld [vmem:[#allocation5 + $0x628] sm:$0xf]  ;;  %v3714_v24 = vld [vmem:[#allocation5 + $0x2f8] sm:$0xf0] }
  0xec   : > { %2293 = vmatpush.bf16.msrb.mxu3 %v4353_v42  ;;  %2236 = vmatmul.bf16.vlgmr.msra.gmra.mxu2 %v5630_v63  ;;  %v4272_v42 = vld [vmem:[#allocation5 + $0x748] sm:$0xf]  ;;  %v4850_v51 = vld [vmem:[#allocation5 + $0x434] sm:$0xf0] }
  0xed   : > { %v4273_v53 = vor.u32 %v4950_v43, %v4272_v42  ;;  %v4914_v56 = vld [vmem:[#allocation5 + $0x634] sm:$0xf0]  ;;  %v4256_v58 = vld [vmem:[#allocation5 + $0x728] sm:$0xf]  ;;  %v3570_v42 = vld [vmem:[#allocation5 + $0x1d8] sm:$0xf0] }
  0xee   : > { %2255 = vmatpush.bf16.msrb.mxu0 %v3953_v48  ;;  %2268 = vmatpush.bf16.msrb.mxu1 %v4081_v49  ;;  %v4017_v48 = vor.u32 %v4886_v36, %v4016_v32  ;;  %v4145_v49 = vor.u32 %v4918_v41, %v4144_v39  ;;  %v4946_v59 = vld [vmem:[#allocation5 + $0x734] sm:$0xf0]  ;;  %v3984_v5 = vld [vmem:[#allocation5 + $0x508] sm:$0xf]  ;;  %v3717_v32 = vor.u32 %v4808_v23, %v3714_v24  ;;  %v4772_v36 = vld [vmem:[#allocation5 + $0x1cc] sm:$0xf] }
  0xef   : > { %2281 = vmatpush.bf16.msrb.mxu2 %v4209_v50  ;;  %v3872_v50 = vld [vmem:[#allocation5 + $0x428] sm:$0xf]  ;;  %v4878_v6 = vld [vmem:[#allocation5 + $0x514] sm:$0xf0]  ;;  %v4257_v10 = vor.u32 %v4946_v59, %v4256_v58  ;;  %v4804_v43 = vld [vmem:[#allocation5 + $0x2cc] sm:$0xf] }
  0xf0   : > { %2294 = vmatpush.bf16.msrb.mxu3 %v4337_v54  ;;  %v4882_v54 = vld [vmem:[#allocation5 + $0x534] sm:$0xf0]  ;;  %v3873_v61 = vor.u32 %v4850_v51, %v3872_v50  ;;  %v4112_v8 = vld [vmem:[#allocation5 + $0x608] sm:$0xf]  ;;  %v3985_v25 = vor.u32 %v4878_v6, %v3984_v5  ;;  %v4736_v50 = vld [vmem:[#allocation5 + $0xac] sm:$0xf] }
  0xf1   : > { %v4001_v3 = vor.u32 %v4882_v54, %v4000_v52  ;;  %v4240_v12 = vld [vmem:[#allocation5 + $0x708] sm:$0xf]  ;;  %v3426_v51 = vld [vmem:[#allocation5 + $0xb8] sm:$0xf0]  ;;  %v4768_v52 = vld [vmem:[#allocation5 + $0x1ac] sm:$0xf] }
  0xf2   : > { %2256 = vmatpush.bf16.msrb.mxu0 %v3937_v60  ;;  %2269 = vmatpush.bf16.msrb.mxu1 %v4065_v62  ;;  %v2003_v27 = vpop.f32.mrf.mxu0  ;;  %v2042_v60 = vpop.f32.mrf.mxu3  ;;  %v3856_v62 = vld [vmem:[#allocation5 + $0x408] sm:$0xf]  ;;  %v3554_v54 = vld [vmem:[#allocation5 + $0x1b8] sm:$0xf0]  ;;  %v3429_v59 = vor.u32 %v4736_v50, %v3426_v51  ;;  %v4796_v5 = vld [vmem:[#allocation5 + $0x28c] sm:$0xf] }
  0xf3   : > { %2282 = vmatpush.bf16.msrb.mxu2 %v4193_v0  ;;  %v2004_v33 = vadd.f32 %v2003_v27, %v706_v19  ;;  %v4846_v0 = vld [vmem:[#allocation5 + $0x414] sm:$0xf0]  ;;  %v2018_v19 = vpop.f32.mrf.mxu1  ;;  %v4840_v27 = vld [vmem:[#allocation5 + $0x3ec] sm:$0xf]  ;;  %v3810_v58 = vld [vmem:[#allocation5 + $0x3b8] sm:$0xf0] }
  0xf4   : > { %2295 = vmatpush.bf16.msrb.mxu3 %v4321_v4  ;;  %v2029_v45 = vpop.f32.mrf.mxu2  ;;  %v4129_v4 = vor.u32 %v4914_v56, %v4128_v55  ;;  %v3857_v21 = vor.u32 %v4846_v0, %v3856_v62  ;;  %v4800_v55 = vld [vmem:[#allocation5 + $0x2ac] sm:$0xf]  ;;  %v3682_v56 = vld [vmem:[#allocation5 + $0x2b8] sm:$0xf0] }
  0xf5   : > { %v2017_v47 = vadd.f32 %v2016_v44, %v2004_v33  ;;  %v4740_v33 = vld [vmem:[#allocation5 + $0xcc] sm:$0xf]  ;;  %v3698_v44 = vld [vmem:[#allocation5 + $0x2d8] sm:$0xf0] }
  0xf6   : > { %2257 = vmatpush.bf16.msrb.mxu0 %v3921_v11  ;;  %2270 = vmatpush.bf16.msrb.mxu1 %v4049_v13  ;;  %v4910_v11 = vld [vmem:[#allocation5 + $0x614] sm:$0xf0]  ;;  %v4732_v62 = vld [vmem:[#allocation5 + $0x8c] sm:$0xf]  ;;  %v3410_v0 = vld [vmem:[#allocation5 + $0x98] sm:$0xf0] }
  0xf7   : > { %2283 = vmatpush.bf16.msrb.mxu2 %v4177_v14  ;;  %v2030_v57 = vadd.f32 %v2029_v45, %v2017_v47  ;;  %v4942_v13 = vld [vmem:[#allocation5 + $0x714] sm:$0xf0]  ;;  %v4744_v14 = vld [vmem:[#allocation5 + $0xec] sm:$0xf]  ;;  %v3666_v6 = vld [vmem:[#allocation5 + $0x298] sm:$0xf0] }
  0xf8   : > { %2296 = vmatpush.bf16.msrb.mxu3 %v4305_v20  ;;  %v3461_v30 = vor.u32 %v4744_v14, %v3458_v15  ;;  %v4836_v45 = vld [vmem:[#allocation5 + $0x3cc] sm:$0xf]  ;;  %v3669_v14 = vor.u32 %v4796_v5, %v3666_v6  ;;  %v3522_v23 = vld [vmem:[#allocation5 + $0x178] sm:$0xf0] }
  0xf9   : > { %v5676_v1 = vadd.f32 %v2042_v60, %v2030_v57  ;;  %v4832_v57 = vld [vmem:[#allocation5 + $0x3ac] sm:$0xf]  ;;  %v3557_v60 = vor.u32 %v4768_v52, %v3554_v54  ;;  %v3474_v6 = vld [vmem:[#allocation5 + $0x118] sm:$0xf0] }
  0xfa   : > { %2258 = vmatpush.bf16.msrb.mxu0 %v3905_v26  ;;  %2271 = vmatpush.bf16.msrb.mxu1 %v4033_v28  ;;  %v2005_v2 = vpop.f32.mrf.mxu0  ;;  %v4113_v26 = vor.u32 %v4910_v11, %v4112_v8  ;;  %v3842_v28 = vld [vmem:[#allocation5 + $0x3f8] sm:$0xf0]  ;;  %v2044_v39 = vpop.f32.mrf.mxu3  ;;  %v4828_v8 = vld [vmem:[#allocation5 + $0x38c] sm:$0xf]  ;;  %v3413_v11 = vor.u32 %v4732_v62, %v3410_v0 }
  0xfb   : > { %2284 = vmatpush.bf16.msrb.mxu2 %v4161_v29  ;;  %v4241_v29 = vor.u32 %v4942_v13, %v4240_v12  ;;  %v3845_v41 = vor.u32 %v4840_v27, %v3842_v28  ;;  %v4764_v2 = vld [vmem:[#allocation5 + $0x18c] sm:$0xf]  ;;  %v3778_v27 = vld [vmem:[#allocation5 + $0x378] sm:$0xf0] }
  0xfc   : > { %2297 = vmatpush.bf16.msrb.mxu3 %v4289_v35  ;;  %v2031_v20 = vpop.f32.mrf.mxu2  ;;  %v3442_v35 = vld [vmem:[#allocation5 + $0xd8] sm:$0xf0]  ;;  %v4728_v15 = vld [vmem:[#allocation5 + $0x6c] sm:$0xf] }
  0xfd   : > { %v3445_v47 = vor.u32 %v4740_v33, %v3442_v35  ;;  %v4760_v19 = vld [vmem:[#allocation5 + $0x16c] sm:$0xf]  ;;  %v3378_v33 = vld [vmem:[#allocation5 + $0x58] sm:$0xf0] }
  0xfe   : > { %2259 = vmatpush.bf16.msrb.mxu0 %v3889_v46  ;;  %2272 = vmatpush.bf16.msrb.mxu1 %v4017_v48  ;;  %v3826_v46 = vld [vmem:[#allocation5 + $0x3d8] sm:$0xf0]  ;;  %v3573_v48 = vor.u32 %v4772_v36, %v3570_v42  ;;  %v4792_v24 = vld [vmem:[#allocation5 + $0x26c] sm:$0xf] }
  0xff   : > { %2285 = vmatpush.bf16.msrb.mxu2 %v4145_v49  ;;  %v3701_v49 = vor.u32 %v4804_v43, %v3698_v44  ;;  %v4756_v35 = vld [vmem:[#allocation5 + $0x14c] sm:$0xf]  ;;  %v3506_v39 = vld [vmem:[#allocation5 + $0x158] sm:$0xf0] }
 0x100   : > { %2298 = vmatpush.bf16.msrb.mxu3 %v4273_v53  ;;  %v3829_v53 = vor.u32 %v4836_v45, %v3826_v46  ;;  %v3634_v42 = vld [vmem:[#allocation5 + $0x258] sm:$0xf0]  ;;  %v4820_v45 = vld [vmem:[#allocation5 + $0x34c] sm:$0xf]  ;;  %v3509_v50 = vor.u32 %v4756_v35, %v3506_v39 }
 0x101   : > { %v3762_v46 = vld [vmem:[#allocation5 + $0x358] sm:$0xf0]  ;;  %v4720_v52 = vld [vmem:[#allocation5 + $0x2c] sm:$0xf] }
 0x102   : > { %2260 = vmatpush.bf16.msrb.mxu0 %v3873_v61  ;;  %2273 = vmatpush.bf16.msrb.mxu1 %v4001_v3  ;;  %v3685_v61 = vor.u32 %v4800_v55, %v3682_v56  ;;  %v3813_v3 = vor.u32 %v4832_v57, %v3810_v58  ;;  %v4752_v54 = vld [vmem:[#allocation5 + $0x12c] sm:$0xf]  ;;  %v3765_v56 = vor.u32 %v4820_v45, %v3762_v46  ;;  %v3490_v57 = vld [vmem:[#allocation5 + $0x138] sm:$0xf0] }
 0x103   : > { %2286 = vmatpush.bf16.msrb.mxu2 %v4129_v4  ;;  %v3538_v4 = vld [vmem:[#allocation5 + $0x198] sm:$0xf0]  ;;  %v4784_v58 = vld [vmem:[#allocation5 + $0x22c] sm:$0xf] }
 0x104   : > { %2299 = vmatpush.bf16.msrb.mxu3 %v4257_v10  ;;  %v3794_v10 = vld [vmem:[#allocation5 + $0x398] sm:$0xf0]  ;;  %v3541_v13 = vor.u32 %v4764_v2, %v3538_v4  ;;  %v4716_v0 = vld [vmem:[#allocation5 + $0xc] sm:$0xf] }
 0x105   : > { %v3797_v22 = vor.u32 %v4828_v8, %v3794_v10  ;;  %v3346_v2 = vld [vmem:[#allocation5 + $0x18] sm:$0xf0]  ;;  %v4748_v5 = vld [vmem:[#allocation5 + $0x10c] sm:$0xf] }
 0x106   : > { %2261 = vmatpush.bf16.msrb.mxu0 %v3857_v21  ;;  %2274 = vmatpush.bf16.msrb.mxu1 %v3985_v25  ;;  %v2055_v12 = vpop.f32.mrf.mxu0  ;;  %v2068_v21 = vpop.f32.mrf.mxu1  ;;  %v3650_v25 = vld [vmem:[#allocation5 + $0x278] sm:$0xf0]  ;;  %v4780_v8 = vld [vmem:[#allocation5 + $0x20c] sm:$0xf] }
 0x107   : > { %2287 = vmatpush.bf16.msrb.mxu2 %v4113_v26  ;;  %v2056_v20 = vadd.f32 %v2055_v12, %v5676_v1  ;;  %v4824_v26 = vld [vmem:[#allocation5 + $0x36c] sm:$0xf]  ;;  %v3602_v12 = vld [vmem:[#allocation5 + $0x218] sm:$0xf0] }
 0x108   : > { %2300 = vmatpush.bf16.msrb.mxu3 %v4241_v29  ;;  %v3397_v29 = vor.u32 %v4728_v15, %v3394_v18  ;;  %v3781_v1 = vor.u32 %v4824_v26, %v3778_v27  ;;  %v4872_v18 = vld [vmem:[#allocation5 + $0x4ec] sm:$0xf]  ;;  %v3605_v26 = vor.u32 %v4780_v8, %v3602_v12  ;;  %v3954_v35 = vld [vmem:[#allocation5 + $0x4d8] sm:$0xf0] }
 0x109   : > { %2262 = vmatmul.bf16.vlgmr.msrb.gmra.mxu0 %v5651_v37  ;;  %2275 = vmatmul.bf16.vlgmr.msrb.gmra.mxu1 %v5655_v40  ;;  %v2069_v28 = vadd.f32 %v2068_v21, %v2056_v20  ;;  %v4904_v20 = vld [vmem:[#allocation5 + $0x5ec] sm:$0xf]  ;;  %v3349_v21 = vor.u32 %v4716_v0, %v3346_v2  ;;  %v4082_v39 = vld [vmem:[#allocation5 + $0x5d8] sm:$0xf0] }
 0x10a   : > { %2306 = vmatpush.bf16.msra.mxu0 %v3461_v30  ;;  %2319 = vmatpush.bf16.msra.mxu1 %v3589_v31  ;;  %v3525_v30 = vor.u32 %v4760_v19, %v3522_v23  ;;  %v3653_v31 = vor.u32 %v4792_v24, %v3650_v25  ;;  %v3970_v19 = vld [vmem:[#allocation5 + $0x4f8] sm:$0xf0]  ;;  %v4936_v23 = vld [vmem:[#allocation5 + $0x6ec] sm:$0xf]  ;;  %v3477_v25 = vor.u32 %v4748_v5, %v3474_v6 }
 0x10b   : > { %2332 = vmatpush.bf16.msra.mxu2 %v3717_v32  ;;  %2301 = vmatmul.bf16.vlgmr.msrb.gmra.mxu3 %v5653_v38  ;;  %v4724_v32 = vld [vmem:[#allocation5 + $0x4c] sm:$0xf]  ;;  %v4226_v24 = vld [vmem:[#allocation5 + $0x6f8] sm:$0xf0] }
 0x10c   : > { %2345 = vmatpush.bf16.msra.mxu3 %v3845_v41  ;;  %2288 = vmatmul.bf16.vlgmr.msrb.gmra.mxu2 %v5649_v34  ;;  %v4788_v41 = vld [vmem:[#allocation5 + $0x24c] sm:$0xf]  ;;  %v4050_v2 = vld [vmem:[#allocation5 + $0x598] sm:$0xf0] }
 0x10d   : > { %v3637_v51 = vor.u32 %v4788_v41, %v3634_v42  ;;  %v4968_v27 = vld [vmem:[#allocation5 + $0x7ec] sm:$0xf]  ;;  %v4210_v42 = vld [vmem:[#allocation5 + $0x6d8] sm:$0xf0] }
 0x10e   : > { %2307 = vmatpush.bf16.msra.mxu0 %v3445_v47  ;;  %2320 = vmatpush.bf16.msra.mxu1 %v3573_v48  ;;  %v2094_v44 = vpop.f32.mrf.mxu3  ;;  %v3381_v47 = vor.u32 %v4724_v32, %v3378_v33  ;;  %v2070_v55 = vpop.f32.mrf.mxu1  ;;  %v4229_v32 = vor.u32 %v4936_v23, %v4226_v24  ;;  %v4868_v33 = vld [vmem:[#allocation5 + $0x4cc] sm:$0xf] }
 0x10f   : > { %2333 = vmatpush.bf16.msra.mxu2 %v3701_v49  ;;  %v2081_v36 = vpop.f32.mrf.mxu2  ;;  %v2057_v49 = vpop.f32.mrf.mxu0  ;;  %v4932_v41 = vld [vmem:[#allocation5 + $0x6cc] sm:$0xf]  ;;  %v3957_v45 = vor.u32 %v4868_v33, %v3954_v35  ;;  %v4194_v55 = vld [vmem:[#allocation5 + $0x6b8] sm:$0xf0] }
 0x110   : > { %2346 = vmatpush.bf16.msra.mxu3 %v3829_v53  ;;  %v2082_v43 = vadd.f32 %v2081_v36, %v2069_v28  ;;  %v3362_v53 = vld [vmem:[#allocation5 + $0x38] sm:$0xf0]  ;;  %v4900_v36 = vld [vmem:[#allocation5 + $0x5cc] sm:$0xf] }
 0x111   : > { %v3365_v62 = vor.u32 %v4720_v52, %v3362_v53  ;;  %v4354_v28 = vld [vmem:[#allocation5 + $0x7f8] sm:$0xf0]  ;;  %v4085_v46 = vor.u32 %v4900_v36, %v4082_v39  ;;  %v4864_v49 = vld [vmem:[#allocation5 + $0x4ac] sm:$0xf] }
 0x112   : > { %2308 = vmatpush.bf16.msra.mxu0 %v3429_v59  ;;  %2321 = vmatpush.bf16.msra.mxu1 %v3557_v60  ;;  %v5683_v48 = vadd.f32 %v2094_v44, %v2082_v43  ;;  %v3618_v59 = vld [vmem:[#allocation5 + $0x238] sm:$0xf0]  ;;  %v4816_v60 = vld [vmem:[#allocation5 + $0x32c] sm:$0xf] }
 0x113   : > { %2334 = vmatpush.bf16.msra.mxu2 %v3685_v61  ;;  %v3746_v61 = vld [vmem:[#allocation5 + $0x338] sm:$0xf0]  ;;  %v3621_v4 = vor.u32 %v4784_v58, %v3618_v59  ;;  %v4964_v43 = vld [vmem:[#allocation5 + $0x7cc] sm:$0xf] }
 0x114   : > { %2347 = vmatpush.bf16.msra.mxu3 %v3813_v3  ;;  %v3493_v3 = vor.u32 %v4752_v54, %v3490_v57  ;;  %v4338_v44 = vld [vmem:[#allocation5 + $0x7d8] sm:$0xf0]  ;;  %v4928_v54 = vld [vmem:[#allocation5 + $0x6ac] sm:$0xf]  ;;  %vm2410_vm1 = vcmp.gt.f32.partialorder %v5683_v48, 0.0 }
 0x115   : > { %v4341_v52 = vor.u32 %v4964_v43, %v4338_v44  ;;  %v4066_v53 = vld [vmem:[#allocation5 + $0x5b8] sm:$0xf0]  ;;  %v4956_v5 = vld [vmem:[#allocation5 + $0x78c] sm:$0xf] }
 0x116   : > { %2309 = vmatpush.bf16.msra.mxu0 %v3413_v11  ;;  %2322 = vmatpush.bf16.msra.mxu1 %v3541_v13  ;;  %v3749_v11 = vor.u32 %v4816_v60, %v3746_v61  ;;  %v4812_v13 = vld [vmem:[#allocation5 + $0x30c] sm:$0xf]  ;;  %v2096_v15 = vpop.f32.mrf.mxu3  ;;  %v4322_v57 = vld [vmem:[#allocation5 + $0x7b8] sm:$0xf0]  ;;  %v4197_v60 = vor.u32 %v4928_v54, %v4194_v55  ;;  %v707_v54 = vperm.slane %v5673_v7, 1 }
 0x117   : > { %2335 = vmatpush.bf16.msra.mxu2 %v3669_v14  ;;  %v2083_v10 = vpop.f32.mrf.mxu2  ;;  %v3730_v14 = vld [vmem:[#allocation5 + $0x318] sm:$0xf0]  ;;  %v4860_v61 = vld [vmem:[#allocation5 + $0x48c] sm:$0xf] }
 0x118   : > { %2348 = vmatpush.bf16.msra.mxu3 %v3797_v22  ;;  %v4098_v22 = vld [vmem:[#allocation5 + $0x5f8] sm:$0xf0]  ;;  %v4856_v10 = vld [vmem:[#allocation5 + $0x46c] sm:$0xf] }
 0x119   : > { %v4888_v12 = vld [vmem:[#allocation5 + $0x56c] sm:$0xf]  ;;  %v4034_v15 = vld [vmem:[#allocation5 + $0x578] sm:$0xf0] }
 0x11a   : > { %2310 = vmatpush.bf16.msra.mxu0 %v3397_v29  ;;  %2323 = vmatpush.bf16.msra.mxu1 %v3525_v30  ;;  %v3733_v29 = vor.u32 %v4812_v13, %v3730_v14  ;;  %v3973_v30 = vor.u32 %v4872_v18, %v3970_v19  ;;  %v4920_v18 = vld [vmem:[#allocation5 + $0x66c] sm:$0xf]  ;;  %v4162_v19 = vld [vmem:[#allocation5 + $0x678] sm:$0xf0]  ;;  %v4037_v23 = vor.u32 %v4888_v12, %v4034_v15 }
 0x11b   : > { %2336 = vmatpush.bf16.msra.mxu2 %v3653_v31  ;;  %v4101_v31 = vor.u32 %v4904_v20, %v4098_v22  ;;  %v4952_v20 = vld [vmem:[#allocation5 + $0x76c] sm:$0xf]  ;;  %v4165_v24 = vor.u32 %v4920_v18, %v4162_v19  ;;  %v4274_v36 = vld [vmem:[#allocation5 + $0x758] sm:$0xf0] }
 0x11c   : > { %2349 = vmatpush.bf16.msra.mxu3 %v3781_v1  ;;  %v4357_v1 = vor.u32 %v4968_v27, %v4354_v28  ;;  %v4884_v27 = vld [vmem:[#allocation5 + $0x54c] sm:$0xf]  ;;  %v3874_v44 = vld [vmem:[#allocation5 + $0x438] sm:$0xf0] }
 0x11d   : > { %v4948_v35 = vld [vmem:[#allocation5 + $0x74c] sm:$0xf]  ;;  %v4986_v7 = vld [vmem:[#allocation8 + $0x74] sm:$0xf0] }
 0x11e   : > { %2311 = vmatpush.bf16.msra.mxu0 %v3381_v47  ;;  %2324 = vmatpush.bf16.msra.mxu1 %v3509_v50  ;;  %v4213_v47 = vor.u32 %v4932_v41, %v4210_v42  ;;  %v3938_v50 = vld [vmem:[#allocation5 + $0x4b8] sm:$0xf0]  ;;  %v4848_v43 = vld [vmem:[#allocation5 + $0x42c] sm:$0xf] }
 0x11f   : > { %2337 = vmatpush.bf16.msra.mxu2 %v3637_v51  ;;  %v4896_v51 = vld [vmem:[#allocation5 + $0x5ac] sm:$0xf]  ;;  %v3941_v58 = vor.u32 %v4864_v49, %v3938_v50  ;;  %v4002_v49 = vld [vmem:[#allocation5 + $0x538] sm:$0xf0]  ;;  %v3877_v55 = vor.u32 %v4848_v43, %v3874_v44  ;;  %v4384_v43 = vld [vmem:[#allocation8 + $0x30] sm:$0xf] }
 0x120   : > { %2350 = vmatpush.bf16.msra.mxu3 %v3765_v56  ;;  %v4960_v56 = vld [vmem:[#allocation5 + $0x7ac] sm:$0xf]  ;;  %v4069_v59 = vor.u32 %v4896_v51, %v4066_v53  ;;  %v4130_v51 = vld [vmem:[#allocation5 + $0x638] sm:$0xf0]  ;;  %v4448_v44 = vld [vmem:[#allocation8 + $0xb0] sm:$0xf] }
 0x121   : > { %v4325_v0 = vor.u32 %v4960_v56, %v4322_v57  ;;  %v4912_v50 = vld [vmem:[#allocation5 + $0x62c] sm:$0xf]  ;;  %v4258_v53 = vld [vmem:[#allocation5 + $0x738] sm:$0xf0] }
 0x122   : > { %2312 = vmatpush.bf16.msra.mxu0 %v3365_v62  ;;  %2325 = vmatpush.bf16.msra.mxu1 %v3493_v3  ;;  %v3922_v62 = vld [vmem:[#allocation5 + $0x498] sm:$0xf0]  ;;  %v4924_v3 = vld [vmem:[#allocation5 + $0x68c] sm:$0xf] }
 0x123   : > { %2338 = vmatpush.bf16.msra.mxu2 %v3621_v4  ;;  %v4178_v4 = vld [vmem:[#allocation5 + $0x698] sm:$0xf0]  ;;  %v4844_v56 = vld [vmem:[#allocation5 + $0x40c] sm:$0xf] }
 0x124   : > { %2351 = vmatpush.bf16.msra.mxu3 %v3749_v11  ;;  %v4181_v8 = vor.u32 %v4924_v3, %v4178_v4  ;;  %v3906_v11 = vld [vmem:[#allocation5 + $0x478] sm:$0xf0]  ;;  %v4940_v3 = vld [vmem:[#allocation5 + $0x70c] sm:$0xf] }
 0x125   : > { %v3909_v22 = vor.u32 %v4856_v10, %v3906_v11  ;;  %v5002_v10 = vld [vmem:[#allocation8 + $0xf4] sm:$0xf0] }
 0x126   : > { %2313 = vmatpush.bf16.msra.mxu0 %v3349_v21  ;;  %2326 = vmatpush.bf16.msra.mxu1 %v3477_v25  ;;  %v5689_v6 = vpop.f32.mrf.mxu0  ;;  %v5691_v13 = vpop.f32.mrf.mxu1  ;;  %v4290_v21 = vld [vmem:[#allocation5 + $0x778] sm:$0xf0]  ;;  %v4852_v25 = vld [vmem:[#allocation5 + $0x44c] sm:$0xf] }
 0x127   : > { %2339 = vmatpush.bf16.msra.mxu2 %v3605_v26  ;;  %v3890_v26 = vld [vmem:[#allocation5 + $0x458] sm:$0xf0] }
 0x128   : > { %2352 = vmatpush.bf16.msra.mxu3 %v3733_v29  ;;  %v4293_v29 = vor.u32 %v4952_v20, %v4290_v21  ;;  %v4408_v20 = vld [vmem:[#allocation8 + $0x60] sm:$0xf]  ;;  %v4984_v21 = vld [vmem:[#allocation8 + $0x64] sm:$0xf0] }
 0x129   : > { %2314 = vmatmul.bf16.vlgmr.msra.gmra.mxu0 %v5634_v9  ;;  %2327 = vmatmul.bf16.vlgmr.msra.gmra.mxu1 %v5640_v17  ;;  %v4306_v9 = vld [vmem:[#allocation5 + $0x798] sm:$0xf0] }
 0x12a   : > { %2358 = vmatpush.bf16.msrb.mxu0 %v3973_v30  ;;  %2371 = vmatpush.bf16.msrb.mxu1 %v4101_v31  ;;  %v4309_v14 = vor.u32 %v4956_v5, %v4306_v9  ;;  %v4018_v30 = vld [vmem:[#allocation5 + $0x558] sm:$0xf0]  ;;  %v4916_v31 = vld [vmem:[#allocation5 + $0x64c] sm:$0xf]  ;;  %v4416_v9 = vld [vmem:[#allocation8 + $0x70] sm:$0xf] }
 0x12b   : > { %2384 = vmatpush.bf16.msrb.mxu2 %v4229_v32  ;;  %2353 = vmatmul.bf16.vlgmr.msra.gmra.mxu3 %v5638_v16  ;;  %v3925_v16 = vor.u32 %v4860_v61, %v3922_v62  ;;  %v4146_v32 = vld [vmem:[#allocation5 + $0x658] sm:$0xf0]  ;;  %v4021_v41 = vor.u32 %v4884_v27, %v4018_v30  ;;  %v4417_v15 = vor.u32 %v4986_v7, %v4416_v9 }
 0x12c   : > { %2397 = vmatpush.bf16.msrb.mxu3 %v4357_v1  ;;  %2340 = vmatmul.bf16.vlgmr.msra.gmra.mxu2 %v5630_v63  ;;  %v4892_v63 = vld [vmem:[#allocation5 + $0x58c] sm:$0xf]  ;;  %v3893_v1 = vor.u32 %v4852_v25, %v3890_v26  ;;  %v4149_v42 = vor.u32 %v4916_v31, %v4146_v32  ;;  %v3986_v61 = vld [vmem:[#allocation5 + $0x518] sm:$0xf0]  ;;  %v4400_v26 = vld [vmem:[#allocation8 + $0x50] sm:$0xf] }
 0x12d   : > { %v4053_v17 = vor.u32 %v4892_v63, %v4050_v2  ;;  %v4114_v2 = vld [vmem:[#allocation5 + $0x618] sm:$0xf0] }
 0x12e   : > { %2359 = vmatpush.bf16.msrb.mxu0 %v3957_v45  ;;  %2372 = vmatpush.bf16.msrb.mxu1 %v4085_v46  ;;  %v5695_v33 = vpop.f32.mrf.mxu3  ;;  %v2109_v39 = vpop.f32.mrf.mxu0  ;;  %v4880_v45 = vld [vmem:[#allocation5 + $0x52c] sm:$0xf]  ;;  %v4242_v5 = vld [vmem:[#allocation5 + $0x718] sm:$0xf0] }
 0x12f   : > { %2385 = vmatpush.bf16.msrb.mxu2 %v4213_v47  ;;  %v5693_v28 = vpop.f32.mrf.mxu2  ;;  %v2122_v46 = vpop.f32.mrf.mxu1  ;;  %v4277_v47 = vor.u32 %v4948_v35, %v4274_v36  ;;  %v4005_v57 = vor.u32 %v4880_v45, %v4002_v49  ;;  %v4982_v27 = vld [vmem:[#allocation8 + $0x54] sm:$0xf0]  ;;  %v4980_v35 = vld [vmem:[#allocation8 + $0x44] sm:$0xf0]  ;;  %v4456_v36 = vld [vmem:[#allocation8 + $0xc0] sm:$0xf] }
 0x130   : > { %2398 = vmatpush.bf16.msrb.mxu3 %v4341_v52  ;;  %v4944_v52 = vld [vmem:[#allocation5 + $0x72c] sm:$0xf]  ;;  %v4401_v30 = vor.u32 %v4982_v27, %v4400_v26  ;;  %v5018_v39 = vld [vmem:[#allocation8 + $0x174] sm:$0xf0]  ;;  %v4512_v26 = vld [vmem:[#allocation8 + $0x130] sm:$0xf] }
 0x131   : > { %v4261_v63 = vor.u32 %v4944_v52, %v4258_v53  ;;  %v5016_v49 = vld [vmem:[#allocation8 + $0x164] sm:$0xf0]  ;;  %v4974_v9 = vld [vmem:[#allocation8 + $0x14] sm:$0xf0] }
 0x132   : > { %2360 = vmatpush.bf16.msrb.mxu0 %v3941_v58  ;;  %2373 = vmatpush.bf16.msrb.mxu1 %v4069_v59  ;;  %v4133_v58 = vor.u32 %v4912_v50, %v4130_v51  ;;  %v3858_v59 = vld [vmem:[#allocation5 + $0x418] sm:$0xf0] }
 0x133   : > { %2386 = vmatpush.bf16.msrb.mxu2 %v4197_v60  ;;  %v4876_v60 = vld [vmem:[#allocation5 + $0x50c] sm:$0xf]  ;;  %v5010_v27 = vld [vmem:[#allocation8 + $0x134] sm:$0xf0] }
 0x134   : > { %2399 = vmatpush.bf16.msrb.mxu3 %v4325_v0  ;;  %v4908_v0 = vld [vmem:[#allocation5 + $0x60c] sm:$0xf]  ;;  %v3989_v11 = vor.u32 %v4876_v60, %v3986_v61  ;;  %v4528_v61 = vld [vmem:[#allocation8 + $0x150] sm:$0xf] }
 0x135   : > { %v4117_v12 = vor.u32 %v4908_v0, %v4114_v2 }
 0x136   : > { %2361 = vmatpush.bf16.msrb.mxu0 %v3925_v16  ;;  %2374 = vmatpush.bf16.msrb.mxu1 %v4053_v17  ;;  %v2148_v4 = vpop.f32.mrf.mxu3  ;;  %v2108_v16 = vadd.f32 %v5689_v6, %v707_v54  ;;  %v3861_v17 = vor.u32 %v4844_v56, %v3858_v59  ;;  %v4409_v6 = vor.u32 %v4984_v21, %v4408_v20  ;;  %v4376_v54 = vld [vmem:[#allocation8 + $0x20] sm:$0xf] }
 0x137   : > { %2387 = vmatpush.bf16.msrb.mxu2 %v4181_v8  ;;  %v2135_v62 = vpop.f32.mrf.mxu2  ;;  %v4480_v8 = vld [vmem:[#allocation8 + $0xf0] sm:$0xf]  ;;  %v4440_v56 = vld [vmem:[#allocation8 + $0xa0] sm:$0xf] }
 0x138   : > { %2400 = vmatpush.bf16.msrb.mxu3 %v4309_v14  ;;  %v4245_v14 = vor.u32 %v4940_v3, %v4242_v5  ;;  %v4481_v18 = vor.u32 %v5002_v10, %v4480_v8  ;;  %v2121_v19 = vadd.f32 %v5691_v13, %v2108_v16  ;;  %v4464_v13 = vld [vmem:[#allocation8 + $0xd0] sm:$0xf]  ;;  %v5014_v62 = vld [vmem:[#allocation8 + $0x154] sm:$0xf0]  ;;  %v4520_v8 = vld [vmem:[#allocation8 + $0x140] sm:$0xf] }
 0x139   : > { %v4368_v5 = vld [vmem:[#allocation8 + $0x10] sm:$0xf]  ;;  %v2414_v10 = vmul.f32 0.2, %v5683_v48 }
 0x13a   : > { %2362 = vmatpush.bf16.msrb.mxu0 %v3909_v22  ;;  %2375 = vmatpush.bf16.msrb.mxu1 %v4037_v23  ;;  %v4472_v22 = vld [vmem:[#allocation8 + $0xe0] sm:$0xf]  ;;  %v5000_v23 = vld [vmem:[#allocation8 + $0xe4] sm:$0xf0]  ;;  %v2134_v25 = vadd.f32 %v5693_v28, %v2121_v19  ;;  %v4432_v16 = vld [vmem:[#allocation8 + $0x90] sm:$0xf] }
 0x13b   : > { %2388 = vmatpush.bf16.msrb.mxu2 %v4165_v24  ;;  %v4473_v24 = vor.u32 %v5000_v23, %v4472_v22  ;;  %v4996_v28 = vld [vmem:[#allocation8 + $0xc4] sm:$0xf0]  ;;  %v4985_v23 = vld [vmem:[#allocation8 + $0x74] sm:$0xf] }
 0x13c   : > { %2401 = vmatpush.bf16.msrb.mxu3 %v4293_v29  ;;  %v4998_v29 = vld [vmem:[#allocation8 + $0xd4] sm:$0xf0]  ;;  %v2147_v31 = vadd.f32 %v5695_v33, %v2134_v25  ;;  %v4988_v19 = vld [vmem:[#allocation8 + $0x84] sm:$0xf0] }
 0x13d   : > { %v4465_v32 = vor.u32 %v4998_v29, %v4464_v13  ;;  %v4994_v33 = vld [vmem:[#allocation8 + $0xb4] sm:$0xf0]  ;;  %v5001_v13 = vld [vmem:[#allocation8 + $0xf4] sm:$0xf]  ;;  %v4482_v29 = vld [vmem:[#allocation8 + $0xf8] sm:$0xf0] }
 0x13e   : > { %2363 = vmatpush.bf16.msrb.mxu0 %v3893_v1  ;;  %2376 = vmatpush.bf16.msrb.mxu1 %v4021_v41  ;;  %v4544_v1 = vld [vmem:[#allocation8 + $0x170] sm:$0xf]  ;;  %v4449_v53 = vor.u32 %v4994_v33, %v4448_v44  ;;  %v5006_v33 = vld [vmem:[#allocation8 + $0x114] sm:$0xf0] }
 0x13f   : > { %2389 = vmatpush.bf16.msrb.mxu2 %v4149_v42  ;;  %v4545_v41 = vor.u32 %v5018_v39, %v4544_v1  ;;  %v4457_v42 = vor.u32 %v4996_v28, %v4456_v36  ;;  %v2418_v36 = vsel %vm2410_vm1, %v5683_v48, %v2414_v10  ;;  %v4485_v28 = vor.u32 %v5001_v13, %v4482_v29  ;;  %v4983_v1 = vld [vmem:[#allocation8 + $0x64] sm:$0xf]  ;;  %v4410_v39 = vld [vmem:[#allocation8 + $0x68] sm:$0xf0]  ;;  %v4370_v13 = vld [vmem:[#allocation8 + $0x18] sm:$0xf0] }
 0x140   : > { %2402 = vmatpush.bf16.msrb.mxu3 %v4277_v47  ;;  %v4536_v47 = vld [vmem:[#allocation8 + $0x160] sm:$0xf]  ;;  %v5711_v44 = vpack.c.bf16 %v2418_v36, %v2418_v36  ;;  %v4538_v10 = vld [vmem:[#allocation8 + $0x168] sm:$0xf0] }
 0x141   : > { %v4537_v51 = vor.u32 %v5016_v49, %v4536_v47  ;;  %v4981_v47 = vld [vmem:[#allocation8 + $0x54] sm:$0xf]  ;;  %v4402_v49 = vld [vmem:[#allocation8 + $0x58] sm:$0xf0] }
 0x142   : > { %2364 = vmatpush.bf16.msrb.mxu0 %v3877_v55  ;;  %2377 = vmatpush.bf16.msrb.mxu1 %v4005_v57  ;;  %v4976_v55 = vld [vmem:[#allocation8 + $0x24] sm:$0xf0] }
 0x143   : > { %2390 = vmatpush.bf16.msrb.mxu2 %v4133_v58  ;;  %v4992_v58 = vld [vmem:[#allocation8 + $0xa4] sm:$0xf0]  ;;  %v4377_v0 = vor.u32 %v4976_v55, %v4376_v54  ;;  %v5017_v55 = vld [vmem:[#allocation8 + $0x174] sm:$0xf] }
 0x144   : > { %2403 = vmatpush.bf16.msrb.mxu3 %v4261_v63  ;;  %v4529_v63 = vor.u32 %v5014_v62, %v4528_v61  ;;  %v4441_v3 = vor.u32 %v4992_v58, %v4440_v56  ;;  %v5004_v54 = vld [vmem:[#allocation8 + $0x104] sm:$0xf0]  ;;  %v4546_v56 = vld [vmem:[#allocation8 + $0x178] sm:$0xf0]  ;;  %v4995_v62 = vld [vmem:[#allocation8 + $0xc4] sm:$0xf] }
 0x146   : > { %2365 = vmatpush.bf16.msrb.mxu0 %v3861_v17  ;;  %2378 = vmatpush.bf16.msrb.mxu1 %v3989_v11  ;;  %v2172_v46 = vpop.f32.mrf.mxu1  ;;  %v4990_v17 = vld [vmem:[#allocation8 + $0x94] sm:$0xf0]  ;;  %v4360_v11 = vld [vmem:[#allocation8] sm:$0xf] }
 0x147   : > { %2391 = vmatpush.bf16.msrb.mxu2 %v4117_v12  ;;  %v5012_v12 = vld [vmem:[#allocation8 + $0x144] sm:$0xf0]  ;;  %v4433_v22 = vor.u32 %v4990_v17, %v4432_v16  ;;  %v4450_v16 = vld [vmem:[#allocation8 + $0xb8] sm:$0xf0] }
 0x148   : > { %2404 = vmatpush.bf16.msrb.mxu3 %v4245_v14  ;;  %v4369_v14 = vor.u32 %v4974_v9, %v4368_v5  ;;  %v4521_v20 = vor.u32 %v5012_v12, %v4520_v8  ;;  %v4386_v5 = vld [vmem:[#allocation8 + $0x38] sm:$0xf0]  ;;  %v4993_v9 = vld [vmem:[#allocation8 + $0xb4] sm:$0xf]  ;;  %v5015_v8 = vld [vmem:[#allocation8 + $0x164] sm:$0xf] }
 0x149   : > { %2366 = vmatmul.bf16.vlgmr.msrb.gmra.mxu0 %v5651_v37  ;;  %2379 = vmatmul.bf16.vlgmr.msrb.gmra.mxu1 %v5655_v40  ;;  %v4392_v37 = vld [vmem:[#allocation8 + $0x40] sm:$0xf] }
 0x14a   : > { %2816 = vmatpush.bf16.msra.mxu0 %v4417_v15  ;;  %2829 = vmatpush.bf16.msra.mxu1 %v4481_v18  ;;  %v4393_v40 = vor.u32 %v4980_v35, %v4392_v37  ;;  %v4972_v15 = vld [vmem:[#allocation8 + $0x4] sm:$0xf0]  ;;  %v4424_v18 = vld [vmem:[#allocation8 + $0x80] sm:$0xf] }
 0x14b   : > { %2392 = vmatmul.bf16.vlgmr.msrb.gmra.mxu2 %v5649_v34  ;;  %2405 = vmatmul.bf16.vlgmr.msrb.gmra.mxu3 %v5653_v38  ;;  %v2159_v34 = vpop.f32.mrf.mxu0  ;;  %v4978_v38 = vld [vmem:[#allocation8 + $0x34] sm:$0xf0]  ;;  %v4425_v37 = vor.u32 %v4988_v19, %v4424_v18  ;;  %v4378_v18 = vld [vmem:[#allocation8 + $0x28] sm:$0xf0]  ;;  %v4991_v19 = vld [vmem:[#allocation8 + $0xa4] sm:$0xf] }
 0x14c   : > { %v2160_v45 = vadd.f32 %v2159_v34, %v2147_v31  ;;  %2842 = vmatpush.bf16.msra.mxu2 %v4545_v41  ;;  %v4385_v52 = vor.u32 %v4978_v38, %v4384_v43  ;;  %v4361_v31 = vor.u32 %v4972_v15, %v4360_v11  ;;  %v4999_v41 = vld [vmem:[#allocation8 + $0xe4] sm:$0xf]  ;;  %v4504_v34 = vld [vmem:[#allocation8 + $0x120] sm:$0xf]  ;;  %v4541_v11 = vor.u32 %v5015_v8, %v4538_v10  ;;  %v4592_v8 = vld [vmem:[#allocation8 + $0x1d0] sm:$0xf] }
 0x14d   : > { %v4975_v15 = vld [vmem:[#allocation8 + $0x24] sm:$0xf]  ;;  %v5030_v10 = vld [vmem:[#allocation8 + $0x1d4] sm:$0xf0] }
 0x14e   : > { %2817 = vmatpush.bf16.msra.mxu0 %v4409_v6  ;;  %2830 = vmatpush.bf16.msra.mxu1 %v4473_v24  ;;  %v2173_v50 = vadd.f32 %v2172_v46, %v2160_v45  ;;  %v2198_v60 = vpop.f32.mrf.mxu3  ;;  %v2174_v7 = vpop.f32.mrf.mxu1  ;;  %v4418_v6 = vld [vmem:[#allocation8 + $0x78] sm:$0xf0]  ;;  %v4413_v45 = vor.u32 %v4983_v1, %v4410_v39  ;;  %v4496_v46 = vld [vmem:[#allocation8 + $0x110] sm:$0xf] }
 0x14f   : > { %v2185_v57 = vpop.f32.mrf.mxu2  ;;  %v4421_v35 = vor.u32 %v4985_v23, %v4418_v6  ;;  %v5013_v23 = vld [vmem:[#allocation8 + $0x154] sm:$0xf]  ;;  %v4530_v6 = vld [vmem:[#allocation8 + $0x158] sm:$0xf0] }
 0x150   : > { %2843 = vmatpush.bf16.msra.mxu2 %v4537_v51  ;;  %v2186_v59 = vadd.f32 %v2185_v57, %v2173_v50  ;;  %v4997_v50 = vld [vmem:[#allocation8 + $0xd4] sm:$0xf]  ;;  %v4497_v51 = vor.u32 %v5006_v33, %v4496_v46  ;;  %v4405_v57 = vor.u32 %v4981_v47, %v4402_v49  ;;  %v4514_v33 = vld [vmem:[#allocation8 + $0x138] sm:$0xf0]  ;;  %v5007_v49 = vld [vmem:[#allocation8 + $0x124] sm:$0xf] }
 0x151   : > { %v5009_v46 = vld [vmem:[#allocation8 + $0x134] sm:$0xf] }
 0x152   : > { %2818 = vmatpush.bf16.msra.mxu0 %v4401_v30  ;;  %2831 = vmatpush.bf16.msra.mxu1 %v4465_v32  ;;  %v2199_v4 = vadd.f32 %v2198_v60, %v2186_v59  ;;  %v4513_v30 = vor.u32 %v5010_v27, %v4512_v26  ;;  %v4979_v59 = vld [vmem:[#allocation8 + $0x44] sm:$0xf]  ;;  %v4394_v60 = vld [vmem:[#allocation8 + $0x48] sm:$0xf0]  ;;  %v4973_v27 = vld [vmem:[#allocation8 + $0x14] sm:$0xf]  ;;  %v4517_v47 = vor.u32 %v5009_v46, %v4514_v33 }
 0x153   : > { %v2161_v2 = vpop.f32.mrf.mxu0  ;;  %v4373_v36 = vor.u32 %v4973_v27, %v4370_v13  ;;  %v4568_v27 = vld [vmem:[#allocation8 + $0x1a0] sm:$0xf]  ;;  %v5024_v13 = vld [vmem:[#allocation8 + $0x1a4] sm:$0xf0] }
 0x154   : > { %2844 = vmatpush.bf16.msra.mxu2 %v4529_v63  ;;  %v2415_v21 = vmul.f32 0.2, %v2199_v4  ;;  %vm2411_vm0 = vcmp.gt.f32.partialorder %v2199_v4, 0.0  ;;  %v4458_v63 = vld [vmem:[#allocation8 + $0xc8] sm:$0xf0]  ;;  %v4397_v2 = vor.u32 %v4979_v59, %v4394_v60 }
 0x155   : > { %v4498_v59 = vld [vmem:[#allocation8 + $0x118] sm:$0xf0] }
 0x156   : > { %2819 = vmatpush.bf16.msra.mxu0 %v4393_v40  ;;  %2832 = vmatpush.bf16.msra.mxu1 %v4457_v42  ;;  %v2200_v25 = vpop.f32.mrf.mxu3  ;;  %v2419_v32 = vsel %vm2411_vm0, %v2199_v4, %v2415_v21  ;;  %v4474_v40 = vld [vmem:[#allocation8 + $0xe8] sm:$0xf0]  ;;  %v5008_v42 = vld [vmem:[#allocation8 + $0x124] sm:$0xf0]  ;;  %v4977_v4 = vld [vmem:[#allocation8 + $0x34] sm:$0xf] }
 0x157   : > { %v2187_v24 = vpop.f32.mrf.mxu2  ;;  %v5709_v43 = vpack.c.bf16 %v2419_v32, %v2419_v32  ;;  %v4505_v38 = vor.u32 %v5008_v42, %v4504_v34  ;;  %v4477_v48 = vor.u32 %v4999_v41, %v4474_v40  ;;  %v4389_v12 = vor.u32 %v4977_v4, %v4386_v5  ;;  %v4971_v40 = vld [vmem:[#allocation8 + $0x4] sm:$0xf]  ;;  %v4362_v34 = vld [vmem:[#allocation8 + $0x8] sm:$0xf0]  ;;  %v4600_v4 = vld [vmem:[#allocation8 + $0x1e0] sm:$0xf] }
 0x158   : > { %2845 = vmatpush.bf16.msra.mxu2 %v4521_v20  ;;  %v4442_v20 = vld [vmem:[#allocation8 + $0xa8] sm:$0xf0]  ;;  %v4381_v24 = vor.u32 %v4975_v15, %v4378_v18  ;;  %v4533_v25 = vor.u32 %v5013_v23, %v4530_v6  ;;  %v4987_v42 = vld [vmem:[#allocation8 + $0x84] sm:$0xf]  ;;  %v5032_v5 = vld [vmem:[#allocation8 + $0x1e4] sm:$0xf0] }
 0x159   : > { %v4445_v26 = vor.u32 %v4991_v19, %v4442_v20  ;;  %v5028_v18 = vld [vmem:[#allocation8 + $0x1c4] sm:$0xf0]  ;;  %v4576_v20 = vld [vmem:[#allocation8 + $0x1b0] sm:$0xf] }
 0x15a   : > { %2820 = vmatpush.bf16.msra.mxu0 %v4385_v52  ;;  %2833 = vmatpush.bf16.msra.mxu1 %v4449_v53  ;;  %v4466_v52 = vld [vmem:[#allocation8 + $0xd8] sm:$0xf0]  ;;  %v4488_v53 = vld [vmem:[#allocation8 + $0x100] sm:$0xf] }
 0x15b   : > { %v4469_v58 = vor.u32 %v4997_v50, %v4466_v52  ;;  %v4489_v61 = vor.u32 %v5004_v54, %v4488_v53  ;;  %v4506_v50 = vld [vmem:[#allocation8 + $0x128] sm:$0xf0]  ;;  %v4365_v52 = vor.u32 %v4971_v40, %v4362_v34  ;;  %v4608_v53 = vld [vmem:[#allocation8 + $0x1f0] sm:$0xf]  ;;  %v5033_v40 = vld [vmem:[#allocation8 + $0x1f4] sm:$0xf] }
 0x15c   : > { %2846 = vmatpush.bf16.msra.mxu2 %v4513_v30  ;;  %v4989_v30 = vld [vmem:[#allocation8 + $0x94] sm:$0xf]  ;;  %v4610_v34 = vld [vmem:[#allocation8 + $0x1f8] sm:$0xf0] }
 0x15e   : > { %2821 = vmatpush.bf16.msra.mxu0 %v4377_v0  ;;  %2834 = vmatpush.bf16.msra.mxu1 %v4441_v3  ;;  %v4549_v0 = vor.u32 %v5017_v55, %v4546_v56  ;;  %v4461_v3 = vor.u32 %v4995_v62, %v4458_v63  ;;  %v5034_v55 = vld [vmem:[#allocation8 + $0x1f4] sm:$0xf0]  ;;  %v4509_v56 = vor.u32 %v5007_v49, %v4506_v50  ;;  %v5003_v62 = vld [vmem:[#allocation8 + $0x104] sm:$0xf]  ;;  %v4490_v63 = vld [vmem:[#allocation8 + $0x108] sm:$0xf0] }
 0x15f   : > { %v4594_v49 = vld [vmem:[#allocation8 + $0x1d8] sm:$0xf0] }
 0x160   : > { %2847 = vmatpush.bf16.msra.mxu2 %v4505_v38  ;;  %v4426_v38 = vld [vmem:[#allocation8 + $0x88] sm:$0xf0] }
 0x161   : > { %v4429_v54 = vor.u32 %v4987_v42, %v4426_v38  ;;  %v4613_v42 = vor.u32 %v5033_v40, %v4610_v34  ;;  %v5031_v38 = vld [vmem:[#allocation8 + $0x1e4] sm:$0xf] }
 0x162   : > { %2822 = vmatpush.bf16.msra.mxu0 %v4369_v14  ;;  %2835 = vmatpush.bf16.msra.mxu1 %v4433_v22  ;;  %v4453_v14 = vor.u32 %v4993_v9, %v4450_v16 }
 0x164   : > { %2848 = vmatpush.bf16.msra.mxu2 %v4497_v51 }
 0x166   : > { %2823 = vmatpush.bf16.msra.mxu0 %v4361_v31  ;;  %2836 = vmatpush.bf16.msra.mxu1 %v4425_v37  ;;  %v2211_v7 = vpop.f32.mrf.mxu0  ;;  %v5715_v17 = vpop.f32.mrf.mxu1  ;;  %v4434_v31 = vld [vmem:[#allocation8 + $0x98] sm:$0xf0]  ;;  %v5011_v37 = vld [vmem:[#allocation8 + $0x144] sm:$0xf] }
 0x167   : > { %v4437_v41 = vor.u32 %v4989_v30, %v4434_v31 }
 0x168   : > { %2849 = vmatpush.bf16.msra.mxu2 %v4489_v61 }
 0x169   : > { %2824 = vmatmul.bf16.vlgmr.msra.gmra.mxu0 %v5711_v44  ;;  %2837 = vmatmul.bf16.vlgmr.msra.gmra.mxu1 %v5709_v43 }
 0x16a   : > { %2868 = vmatpush.bf16.msrb.mxu0 %v4421_v35  ;;  %2881 = vmatpush.bf16.msrb.mxu1 %v4485_v28  ;;  %v4522_v35 = vld [vmem:[#allocation8 + $0x148] sm:$0xf0]  ;;  %v5717_v28 = vld [vmem:[#allocation7] sm:$0xf] }
 0x16b   : > { %v708_v1 = vperm.slane %v5717_v28, 2  ;;  %v4525_v39 = vor.u32 %v5011_v37, %v4522_v35  ;;  %v4560_v37 = vld [vmem:[#allocation8 + $0x190] sm:$0xf]  ;;  %v5022_v35 = vld [vmem:[#allocation8 + $0x194] sm:$0xf0] }
 0x16c   : > { %2894 = vmatpush.bf16.msrb.mxu2 %v4549_v0 }
 0x16d   : > { %v2212_v51 = vadd.f32 %v2211_v7, %v708_v1  ;;  %v4601_v7 = vor.u32 %v5032_v5, %v4600_v4  ;;  %v4552_v1 = vld [vmem:[#allocation8 + $0x180] sm:$0xf]  ;;  %v5021_v5 = vld [vmem:[#allocation8 + $0x194] sm:$0xf] }
 0x16e   : > { %2869 = vmatpush.bf16.msrb.mxu0 %v4413_v45  ;;  %2882 = vmatpush.bf16.msrb.mxu1 %v4477_v48  ;;  %v2250_v22 = vpop.f32.mrf.mxu3  ;;  %v2213_v29 = vpop.f32.mrf.mxu0 }
 0x16f   : > { %v2237_v21 = vpop.f32.mrf.mxu2  ;;  %v2226_v32 = vpop.f32.mrf.mxu1  ;;  %v2225_v60 = vadd.f32 %v5715_v17, %v2212_v51 }
 0x170   : > { %2895 = vmatpush.bf16.msrb.mxu2 %v4541_v11  ;;  %v4593_v11 = vor.u32 %v5030_v10, %v4592_v8  ;;  %v4569_v32 = vor.u32 %v5024_v13, %v4568_v27  ;;  %v5019_v8 = vld [vmem:[#allocation8 + $0x184] sm:$0xf]  ;;  %v4554_v10 = vld [vmem:[#allocation8 + $0x188] sm:$0xf0]  ;;  %v2490_v27 = vld [vmem:[%s5773_s4] sm:$0x3] }
 0x171   : > { %v2238_v0 = vadd.f32 %v2237_v21, %v2225_v60  ;;  %v5026_v21 = vld [vmem:[#allocation8 + $0x1b4] sm:$0xf0]  ;;  %v4578_v60 = vld [vmem:[#allocation8 + $0x1b8] sm:$0xf0]  ;;  %v2492_v13 = vperm.slane %v2490_v27, 0 }
 0x172   : > { %2870 = vmatpush.bf16.msrb.mxu0 %v4405_v57  ;;  %2883 = vmatpush.bf16.msrb.mxu1 %v4469_v58  ;;  %v4609_v57 = vor.u32 %v5034_v55, %v4608_v53  ;;  %v5005_v58 = vld [vmem:[#allocation8 + $0x114] sm:$0xf]  ;;  %v4586_v55 = vld [vmem:[#allocation8 + $0x1c8] sm:$0xf0] }
 0x173   : > { %v4501_v61 = vor.u32 %v5005_v58, %v4498_v59  ;;  %v709_v58 = vperm.slane %v5717_v28, 3  ;;  %v5025_v59 = vld [vmem:[#allocation8 + $0x1b4] sm:$0xf]  ;;  %v4557_v28 = vor.u32 %v5019_v8, %v4554_v10 }
 0x174   : > { %2896 = vmatpush.bf16.msrb.mxu2 %v4533_v25  ;;  %2855 = vmatpush.bf16.msra.mxu3 %v4609_v57  ;;  %v4577_v25 = vor.u32 %v5026_v21, %v4576_v20 }
 0x176   : > { %2871 = vmatpush.bf16.msrb.mxu0 %v4397_v2  ;;  %2884 = vmatpush.bf16.msrb.mxu1 %v4461_v3  ;;  %v2252_v48 = vpop.f32.mrf.mxu3  ;;  %v4493_v2 = vor.u32 %v5003_v62, %v4490_v63  ;;  %v2251_v3 = vadd.f32 %v2250_v22, %v2238_v0  ;;  %v4581_v62 = vor.u32 %v5025_v59, %v4578_v60  ;;  %v5023_v63 = vld [vmem:[#allocation8 + $0x1a4] sm:$0xf]  ;;  %v4570_v0 = vld [vmem:[#allocation8 + $0x1a8] sm:$0xf0]  ;;  %v5046_v59 = vld [vmem:[#allocation10 + $0x58] sm:$0xff] }
 0x177   : > { %v2239_v45 = vpop.f32.mrf.mxu2  ;;  %v5045_v60 = vld [vmem:[#allocation10 + $0x50] sm:$0xff] }
 0x178   : > { %2897 = vmatpush.bf16.msrb.mxu2 %v4525_v39  ;;  %2856 = vmatpush.bf16.msra.mxu3 %v4601_v7  ;;  %v5020_v39 = vld [vmem:[#allocation8 + $0x184] sm:$0xf0]  ;;  %v4602_v45 = vld [vmem:[#allocation8 + $0x1e8] sm:$0xf0] }
 0x179   : > { %v4605_v33 = vor.u32 %v5031_v38, %v4602_v45  ;;  %v5042_v38 = vld [vmem:[#allocation10 + $0x38] sm:$0xff] }
 0x17a   : > { %2872 = vmatpush.bf16.msrb.mxu0 %v4389_v12  ;;  %2885 = vmatpush.bf16.msrb.mxu1 %v4453_v14  ;;  %v5050_v45 = vld [vmem:[#allocation10 + $0x78] sm:$0xff] }
 0x17c   : > { %2898 = vmatpush.bf16.msrb.mxu2 %v4517_v47  ;;  %2857 = vmatpush.bf16.msra.mxu3 %v4593_v11  ;;  %v5029_v47 = vld [vmem:[#allocation8 + $0x1d4] sm:$0xf] }
 0x17d   : > { %v4597_v51 = vor.u32 %v5029_v47, %v4594_v49  ;;  %v5039_v49 = vld [vmem:[#allocation10 + $0x20] sm:$0xff] }
 0x17e   : > { %2873 = vmatpush.bf16.msrb.mxu0 %v4381_v24  ;;  %2886 = vmatpush.bf16.msrb.mxu1 %v4445_v26 }
 0x180   : > { %2899 = vmatpush.bf16.msrb.mxu2 %v4509_v56 }
 0x182   : > { %2874 = vmatpush.bf16.msrb.mxu0 %v4373_v36  ;;  %2887 = vmatpush.bf16.msrb.mxu1 %v4437_v41  ;;  %v4561_v36 = vor.u32 %v5022_v35, %v4560_v37  ;;  %v4553_v41 = vor.u32 %v5020_v39, %v4552_v1 }
 0x184   : > { %2900 = vmatpush.bf16.msrb.mxu2 %v4501_v61 }
 0x186   : > { %2875 = vmatpush.bf16.msrb.mxu0 %v4365_v52  ;;  %2888 = vmatpush.bf16.msrb.mxu1 %v4429_v54  ;;  %v2263_v9 = vpop.f32.mrf.mxu0  ;;  %v2276_v17 = vpop.f32.mrf.mxu1  ;;  %v5027_v54 = vld [vmem:[#allocation8 + $0x1c4] sm:$0xf] }
 0x187   : > { %v2264_v16 = vadd.f32 %v2263_v9, %v2251_v3  ;;  %v4589_v57 = vor.u32 %v5027_v54, %v4586_v55  ;;  %v4573_v3 = vor.u32 %v5023_v63, %v4570_v0  ;;  %v4562_v9 = vld [vmem:[#allocation8 + $0x198] sm:$0xf0]  ;;  %v5036_v55 = vld [vmem:[#allocation10 + $0x8] sm:$0xff]  ;;  %v5057_v0 = vld [vmem:[#allocation11 + $0x30] sm:$0xff] }
 0x188   : > { %2901 = vmatpush.bf16.msrb.mxu2 %v4493_v2  ;;  %v4565_v7 = vor.u32 %v5021_v5, %v4562_v9  ;;  %v5058_v63 = vld [vmem:[#allocation11 + $0x38] sm:$0xff] }
 0x189   : > { %2876 = vmatmul.bf16.vlgmr.msrb.gmra.mxu0 %v5711_v44  ;;  %2889 = vmatmul.bf16.vlgmr.msrb.gmra.mxu1 %v5709_v43  ;;  %v2277_v44 = vadd.f32 %v2276_v17, %v2264_v16  ;;  %v4584_v43 = vld [vmem:[#allocation8 + $0x1c0] sm:$0xf] }
 0x18a   : > { %v4585_v19 = vor.u32 %v5028_v18, %v4584_v43  ;;  %3060 = vmatpush.bf16.msra.mxu0 %v5042_v38  ;;  %3073 = vmatpush.bf16.msra.mxu1 %v5050_v45 }
 0x18c   : > { %2858 = vmatpush.bf16.msra.mxu3 %v4585_v19 }
 0x18e   : > { %v2302_v15 = vpop.f32.mrf.mxu3  ;;  %v2265_v23 = vpop.f32.mrf.mxu0 }
 0x18f   : > { %v2289_v12 = vpop.f32.mrf.mxu2  ;;  %v2278_v6 = vpop.f32.mrf.mxu1 }
 0x190   : > { %v2290_v14 = vadd.f32 %v2289_v12, %v2277_v44  ;;  %2859 = vmatpush.bf16.msra.mxu3 %v4577_v25 }
 0x192   : > { %v2303_v22 = vadd.f32 %v2302_v15, %v2290_v14 }
 0x194   : > { %vm2412_vm2 = vcmp.gt.f32.partialorder %v2303_v22, 0.0  ;;  %v2416_v24 = vmul.f32 0.2, %v2303_v22  ;;  %2860 = vmatpush.bf16.msra.mxu3 %v4569_v32 }
 0x196   : > { %v2420_v26 = vsel %vm2412_vm2, %v2303_v22, %v2416_v24  ;;  %v2304_v31 = vpop.f32.mrf.mxu3 }
 0x197   : > { %v2424_v29 = vpack.c.bf16 %v2420_v26, %v2420_v26  ;;  %v2291_v30 = vpop.f32.mrf.mxu2 }
 0x198   : > { %2861 = vmatpush.bf16.msra.mxu3 %v4561_v36  ;;  %v2493_v36 = vperm.slane %v2490_v27, 1 }
 0x199   : > { %2850 = vmatmul.bf16.vlgmr.msra.gmra.mxu2 %v2424_v29 }
 0x19a   : > { %3158 = vmatpush.bf16.msra.mxu2 %v5058_v63 }
 0x19c   : > { %2862 = vmatpush.bf16.msra.mxu3 %v4553_v41 }
 0x19e   : > { %3159 = vmatpush.bf16.msra.mxu2 %v5057_v0 }
 0x1a0   : > { %2907 = vmatpush.bf16.msrb.mxu3 %v4613_v42 }
 0x1a4   : > { %2908 = vmatpush.bf16.msrb.mxu3 %v4605_v33  ;;  %v5049_v33 = vld [vmem:[#allocation10 + $0x70] sm:$0xff] }
 0x1a5   : > { %3074 = vmatpush.bf16.msra.mxu1 %v5049_v33 }
 0x1a6   : > { %v2315_v46 = vpop.f32.mrf.mxu0  ;;  %v2328_v48 = vpop.f32.mrf.mxu1 }
 0x1a7   : > { %v2316_v4 = vadd.f32 %v2315_v46, %v709_v58  ;;  %v5041_v46 = vld [vmem:[#allocation10 + $0x30] sm:$0xff]  ;;  %v5047_v58 = vld [vmem:[#allocation10 + $0x60] sm:$0xff] }
 0x1a8   : > { %2909 = vmatpush.bf16.msrb.mxu3 %v4597_v51  ;;  %3061 = vmatpush.bf16.msra.mxu0 %v5041_v46 }
 0x1a9   : > { %2902 = vmatmul.bf16.vlgmr.msrb.gmra.mxu2 %v2424_v29  ;;  %v2329_v16 = vadd.f32 %v2328_v48, %v2316_v4  ;;  %v5040_v48 = vld [vmem:[#allocation10 + $0x28] sm:$0xff] }
 0x1ac   : > { %2910 = vmatpush.bf16.msrb.mxu3 %v4589_v57  ;;  %3062 = vmatpush.bf16.msra.mxu0 %v5040_v48  ;;  %v5035_v57 = vld [vmem:[#allocation10] sm:$0xff] }
 0x1ae   : > { %v2354_v52 = vpop.f32.mrf.mxu3  ;;  %v2317_v53 = vpop.f32.mrf.mxu0 }
 0x1af   : > { %v2341_v50 = vpop.f32.mrf.mxu2  ;;  %v2330_v56 = vpop.f32.mrf.mxu1 }
 0x1b0   : > { %2911 = vmatpush.bf16.msrb.mxu3 %v4581_v62  ;;  %v2342_v17 = vadd.f32 %v2341_v50, %v2329_v16  ;;  %3063 = vmatpush.bf16.msra.mxu0 %v5039_v49  ;;  %v5038_v50 = vld [vmem:[#allocation10 + $0x18] sm:$0xff]  ;;  %v5048_v56 = vld [vmem:[#allocation10 + $0x68] sm:$0xff]  ;;  %v5043_v62 = vld [vmem:[#allocation10 + $0x40] sm:$0xff] }
 0x1b1   : > { %3075 = vmatpush.bf16.msra.mxu1 %v5048_v56 }
 0x1b2   : > { %v2355_v11 = vadd.f32 %v2354_v52, %v2342_v17  ;;  %v5037_v52 = vld [vmem:[#allocation10 + $0x10] sm:$0xff] }
 0x1b4   : > { %2912 = vmatpush.bf16.msrb.mxu3 %v4573_v3  ;;  %3064 = vmatpush.bf16.msra.mxu0 %v5038_v50 }
 0x1b5   : > { %3076 = vmatpush.bf16.msra.mxu1 %v5047_v58 }
 0x1b6   : > { %v2356_v2 = vpop.f32.mrf.mxu3 }
 0x1b7   : > { %v2343_v61 = vpop.f32.mrf.mxu2 }
 0x1b8   : > { %2913 = vmatpush.bf16.msrb.mxu3 %v4565_v7  ;;  %3065 = vmatpush.bf16.msra.mxu0 %v5037_v52  ;;  %v5044_v61 = vld [vmem:[#allocation10 + $0x48] sm:$0xff] }
 0x1b9   : > { %3077 = vmatpush.bf16.msra.mxu1 %v5046_v59 }
 0x1bc   : > { %2914 = vmatpush.bf16.msrb.mxu3 %v4557_v28  ;;  %3066 = vmatpush.bf16.msra.mxu0 %v5036_v55 }
 0x1bd   : > { %3078 = vmatpush.bf16.msra.mxu1 %v5045_v60 }
 0x1c0   : > { %3067 = vmatpush.bf16.msra.mxu0 %v5035_v57 }
 0x1c1   : > { %3079 = vmatpush.bf16.msra.mxu1 %v5044_v61 }
 0x1c5   : > { %3080 = vmatpush.bf16.msra.mxu1 %v5043_v62 }
 0x1c6   : > { %v2367_v44 = vpop.f32.mrf.mxu0  ;;  %v2380_v12 = vpop.f32.mrf.mxu1 }
 0x1c7   : > { %v2368_v14 = vadd.f32 %v2367_v44, %v2355_v11 }
 0x1c9   : > { %v2381_v15 = vadd.f32 %v2380_v12, %v2368_v14  ;;  %v5056_v14 = vld [vmem:[#allocation11 + $0x28] sm:$0xff] }
 0x1ca   : > { %3160 = vmatpush.bf16.msra.mxu2 %v5056_v14 }
 0x1ce   : > { %v2393_v43 = vpop.f32.mrf.mxu2  ;;  %v2406_v19 = vpop.f32.mrf.mxu3 }
 0x1cf   : > { %v2394_v18 = vadd.f32 %v2393_v43, %v2381_v15  ;;  %v2369_v20 = vpop.f32.mrf.mxu0  ;;  %v2382_v21 = vpop.f32.mrf.mxu1  ;;  %v5055_v15 = vld [vmem:[#allocation11 + $0x20] sm:$0xff]  ;;  %v5054_v43 = vld [vmem:[#allocation11 + $0x18] sm:$0xff] }
 0x1d0   : > { %3161 = vmatpush.bf16.msra.mxu2 %v5055_v15  ;;  %v5051_v20 = vld [vmem:[#allocation11] sm:$0xff] }
 0x1d1   : > { %v2407_v22 = vadd.f32 %v2406_v19, %v2394_v18  ;;  %v5053_v18 = vld [vmem:[#allocation11 + $0x10] sm:$0xff]  ;;  %v5052_v19 = vld [vmem:[#allocation11 + $0x8] sm:$0xff] }
 0x1d3   : > { %vm2413_vm3 = vcmp.gt.f32.partialorder %v2407_v22, 0.0  ;;  %v2417_v23 = vmul.f32 0.2, %v2407_v22 }
 0x1d4   : > { %3162 = vmatpush.bf16.msra.mxu2 %v5054_v43 }
 0x1d5   : > { %v2421_v6 = vsel %vm2413_vm3, %v2407_v22, %v2417_v23  ;;  %v5162_v23 = vld [vmem:[%s5775_s6] ss:$0 sm:$0xff] }
 0x1d6   : > { %v2425_v24 = vpack.c.bf16 %v2421_v6, %v2421_v6  ;;  %v2395_v25 = vpop.f32.mrf.mxu2  ;;  %v2408_v26 = vpop.f32.mrf.mxu3 }
 0x1d8   : > { %2863 = vmatmul.bf16.vlgmr.msra.gmra.mxu3 %v2425_v24  ;;  %3163 = vmatpush.bf16.msra.mxu2 %v5053_v18 }
 0x1dc   : > { %3164 = vmatpush.bf16.msra.mxu2 %v5052_v19 }
 0x1e0   : > { %3165 = vmatpush.bf16.msra.mxu2 %v5051_v20 }
 0x1e6   : > { %v2825_v29 = vpop.f32.mrf.mxu0  ;;  %v2838_v31 = vpop.f32.mrf.mxu1 }
 0x1e7   : > { %v2826_v30 = vadd.f32 %v2825_v29, %v2492_v13 }
 0x1e8   : > { %2915 = vmatmul.bf16.vlgmr.msrb.gmra.mxu3 %v2425_v24 }
 0x1e9   : > { %v2839_v32 = vadd.f32 %v2838_v31, %v2826_v30  ;;  %v5163_v30 = vld [vmem:[%s5777_s8] ss:$0 sm:$0xff] }
 0x1ee   : > { %v2827_v37 = vpop.f32.mrf.mxu0  ;;  %v2840_v35 = vpop.f32.mrf.mxu1 }
 0x206   : > { %v2877_v1 = vpop.f32.mrf.mxu0  ;;  %v2890_v41 = vpop.f32.mrf.mxu1 }
 0x207   : > { %v2878_v39 = vadd.f32 %v2877_v1, %v2493_v36 }
 0x209   : > { %v2891_v40 = vadd.f32 %v2890_v41, %v2878_v39 }
 0x20e   : > { %v2879_v34 = vpop.f32.mrf.mxu0  ;;  %v2892_v42 = vpop.f32.mrf.mxu1 }
 0x21c   : > { %v2851_v47 = vpop.f32.mrf.mxu2 }
 0x21d   : > { %v2852_v2 = vadd.f32 %v2851_v47, %v2839_v32 }
 0x224   : > { %v2853_v51 = vpop.f32.mrf.mxu2 }
 0x22c   : > { %v2903_v53 = vpop.f32.mrf.mxu2 }
 0x22d   : > { %v2904_v17 = vadd.f32 %v2903_v53, %v2891_v40 }
 0x234   : > { %v2905_v54 = vpop.f32.mrf.mxu2 }
 0x25b   : > { %v2864_v3 = vpop.f32.mrf.mxu3 }
 0x25c   : > { %v2865_v4 = vadd.f32 %v2864_v3, %v2852_v2 }
 0x25e   : > { %vm2920_vm4 = vcmp.gt.f32.partialorder %v2865_v4, 0.0  ;;  %v2922_v5 = vmul.f32 0.2, %v2865_v4 }
 0x260   : > { %v2924_v9 = vsel %vm2920_vm4, %v2865_v4, %v2922_v5 }
 0x261   : > { %v2926_v7 = vpack.c.bf16 %v2924_v9, %v2924_v9 }
 0x263   : > { %v2866_v16 = vpop.f32.mrf.mxu3  ;;  %3068 = vmatmul.bf16.vlgmr.msra.gmra.mxu0 %v2926_v7 }
 0x26b   : > { %v2916_v8 = vpop.f32.mrf.mxu3 }
 0x26c   : > { %v2917_v10 = vadd.f32 %v2916_v8, %v2904_v17 }
 0x26e   : > { %vm2921_vm5 = vcmp.gt.f32.partialorder %v2917_v10, 0.0  ;;  %v2923_v28 = vmul.f32 0.2, %v2917_v10 }
 0x270   : > { %v2925_v11 = vsel %vm2921_vm5, %v2917_v10, %v2923_v28 }
 0x271   : > { %v2927_v44 = vpack.c.bf16 %v2925_v11, %v2925_v11 }
 0x273   : > { %v2918_v12 = vpop.f32.mrf.mxu3  ;;  %3081 = vmatmul.bf16.vlgmr.msra.gmra.mxu1 %v2927_v44 }
 0x2e0   : > { %v3069_v21 = vpop.f32.mrf.mxu0 }
 0x2e1   : > { %v3070_v6 = vadd.f32 %v5162_v23, %v3069_v21 }
 0x2e8   : > { %v3071_v22 = vpop.f32.mrf.mxu0 }
 0x2f0   : > { %v3082_v24 = vpop.f32.mrf.mxu1 }
 0x2f1   : > { %v3083_v25 = vadd.f32 %v3082_v24, %v3070_v6 }
 0x2f3   : > { %vm3086_vm6 = vcmp.gt.f32.partialorder %v3083_v25, 0.0  ;;  %v3087_v26 = vmul.f32 0.2, %v3083_v25 }
 0x2f5   : > { %v3088_v27 = vsel %vm3086_vm6, %v3083_v25, %v3087_v26 }
 0x2f6   : > { %v3089_v13 = vpack.c.bf16 %v3088_v27, %v3088_v27 }
 0x2f8   : > { %v3084_v29 = vpop.f32.mrf.mxu1  ;;  %3166 = vmatmul.bf16.vlgmr.msra.gmra.mxu2 %v3089_v13 }
 0x37b   : > { %v3167_v31 = vpop.f32.mrf.mxu2 }
 0x37c   : > { %v3168_v32 = vadd.f32 %v5163_v30, %v3167_v31 }
 0x37e   : > { %vm3171_vm7 = vcmp.ge.f32.partialorder %v3168_v32, 0.0  ;;  %v3172_v37 = vsub.f32 0.0, %v3168_v32 }
 0x380   : > { %v3173_v35 = vsel %vm3171_vm7, %v3172_v37, %v3168_v32 }
 0x381   : > { %v3174_v36 = vmul.f32 1.442695, %v3173_v35 }
 0x383   : > { %5164 = vpow2.f32 %v3174_v36  ;;  %v3169_v1 = vpop.f32.mrf.mxu2 }
 0x389   : > { %v5165_v39 = vpop.eup %5164 }
 0x38a   : > { %v3176_v41 = vadd.f32 1.0, %v5165_v39 }
 0x38c   : > { %5166 = vrcp.f32 %v3176_v41 }
 0x392   : > { %v5167_v40 = vpop.eup %5166 }
 0x393   : > { %v3178_v34 = vmul.f32 %v5167_v40, %v5165_v39 }
 0x395   : > { %v3179_v42 = vsel %vm3171_vm7, %v5167_v40, %v3178_v34 }
 0x396   : > { %3180 = vst [vmem:[%s431_s13] sm:$0xff] %v3179_v42 }
 0x397   : > { %5376 = shalt.err (!%p5373_p9)
}
 0x398   : > { %5081 = dma.vmem_to_hbm [thread:$0]  (%p5576_p13), %s3195_s26, 128, %s3197_s1, %s3182_s2  }
 0x399 PF: > { %s3208_s19 = sand.u32 1, %s5415_s30   ;;  %p5791_p10 = scmp.ge.s32.totalorder %s5427_s12, 2 }
 0x39a   : > { %s3209_s21 = scalar_lea.sflag [#allocation4], %s3208_s19 }
 0x39b   : > { %p5104_p11 = pnand %p5791_p10, %p5581_p4 }
 0x39d   : > { %p5105_p0 = pneg %p5104_p11 }
 0x39f   : > { %5410 = dma.done.wait (%p5105_p0), %s3209_s21, 128  }
 0x3a0   : > { %5412 = vsyncadd (%p5105_p0), %s3209_s21, 4294967168  ;;  %p25_p2 = scmp.ge.s32.totalorder %s5556_s18, 4   ;;  %s5792_s30 = smov %s5419_s10 }
 0x3a1   : > { %s5793_s10 = smov %s5423_s11  ;;  %s5794_s11 = smov %s5568_s24 }
 0x3a2   : > { %s5795_s12 = smov %s5556_s18  ;;  %27 = sbr.rel (!%p25_p2) target bundleno = 12 (0xc), region = 121 }
 0x3a7   :  { %3215 = vsyncpa [#allocation3], 1 }
 0x3a8   :  { %3217 = vsyncpa [#allocation3 + $0x1], 1 }
 0x3a9   :  { %3218 = vsyncpa [#allocation6], 1 }
 0x3aa   :  { %3219 = vsyncpa [#allocation9], 1 }
 0x3ab   :  { %3220 = vsyncpa [#allocation12], 1 }
 0x3ac   :  { %3221 = vsyncpa [#allocation4], 1 }
 0x3ad   :  { %3223 = vsyncpa [#allocation4 + $0x1], 1 }

</bundles_post_ra>
